<compile_context>
chip_gen: v6e
topology: v6e:2x2x1
jax: 0.10.0
libtpu: 0.0.40
codegen_flags: <defaults>
</compile_context>

<pallas_src>
import functools
import math

import numpy as np
import jax
import jax.numpy as jnp
from jax.experimental import pallas as pl
from jax.experimental.pallas import tpu as pltpu


def _cna_kernel(x_ref, w_ref, shift_ref, o_ref, *,
                k, stride, dilation, tile_h, wo, pad, has_skip):
    """Fused conv (single k*k-tap MXU contraction) + BN shift + ReLU [+ residual]."""
    th, Wo = tile_h, wo
    coutp = o_ref.shape[-1]
    r0 = pl.multiple_of(pl.program_id(1) * (th * stride), th * stride)

    def sl(start, size):
        if stride == 1:
            return pl.ds(start, size)
        return pl.ds(start, size, stride)  # TODO(synk): stride > 1 path is untested on HW.

    # Gather the k*k shifted taps from the resident padded image and fuse them into a single
    # contraction axis (K = k*k*cin_eff) -> one matmul per grid step, no accumulator RMW.
    taps = [x_ref[sl(r0 + kh * dilation, th), sl(kw * dilation, Wo), :]
            for kh in range(k) for kw in range(k)]
    a = taps[0] if len(taps) == 1 else jnp.concatenate(taps, axis=-1)   # (th, Wo, k*k*cin_eff)
    a2 = a.reshape(th * Wo, a.shape[-1])                                # single reshape per step
    y = jnp.dot(a2, w_ref[...], preferred_element_type=jnp.float32)    # (th*Wo, coutp) on MXU
    y = jnp.maximum(y + shift_ref[...], 0.0)                           # BN shift + ReLU

    if has_skip:
        # stride == 1 and Ho == H, Wo == W guaranteed by the wrapper guard; channels padded to coutp.
        res = x_ref[pl.ds(r0 + pad, th), pl.ds(pad, Wo), :]
        y = y + res.reshape(th * Wo, coutp).astype(jnp.float32)

    if len(o_ref.shape) == 2:          # flat (th*Wo, coutp) output block — no output reshape
        o_ref[...] = y.astype(o_ref.dtype)
    else:                              # (th, Wo, coutp) fallback block
        o_ref[...] = y.reshape(th, Wo, coutp).astype(o_ref.dtype)


def _round_up(a, b):
    return (a + b - 1) // b * b


def _vmem_tile_bytes(shape, dtype):
    """Bytes a buffer of `shape` actually occupies in VMEM (lane=128 / sublane padding)."""
    it = jnp.dtype(dtype).itemsize
    sub = 8 * max(1, 4 // it)          # 8 for f32, 16 for bf16, 32 for int8
    dims = list(shape)
    dims[-1] = _round_up(dims[-1], 128)
    if len(dims) >= 2:
        dims[-2] = _round_up(dims[-2], sub)
    n = 1
    for d in dims:
        n *= d
    return n * it


def conv_norm_act(x_nchw, weight_oihw, gamma, beta, run_mean, run_var,
                  kernel_size, stride=1, dilation=1, skip=False,
                  eps=1e-6, target_tile_m=1024, out_dtype=jnp.bfloat16):
    """Pallas implementation of ConvNormAct.forward (bn_2d + relu, drop_path=0, groups=1)."""
    # TODO(synk): grouped / depthwise conv (groups > 1) not implemented; groups=1 path only.
    # TODO(synk): halo-tiled manual-DMA fallback (pl.ANY + make_async_copy) for images whose
    #             single padded copy + weights exceed the per-chip VMEM budget (relevant on v7x).
    N, Cin, H, W = x_nchw.shape
    Cout = weight_oihw.shape[0]
    k = int(kernel_size)
    pad = math.ceil((k - stride) / 2)   # matches the PyTorch module (ignores dilation by design)
    Ho = (H + 2 * pad - dilation * (k - 1) - 1) // stride + 1
    Wo = (W + 2 * pad - dilation * (k - 1) - 1) // stride + 1
    # residual only valid when the conv preserves the spatial shape (as in the PyTorch module usage)
    has_skip = bool(skip) and Cin == Cout and stride == 1 and Ho == H and Wo == W

    # Lane-dense output channels; for skip also pad input channels to the same width so the
    # residual is sliced directly from the resident input tile inside the kernel.
    coutp = max(128, _round_up(Cout, 128))
    cin_eff = coutp if has_skip else Cin
    Kdim = k * k * cin_eff

    # ---- divisor-aware output-row tile (avoid wasted padded rows, prefer aligned th*Wo) ----
    out_itemsize = jnp.dtype(out_dtype).itemsize
    sub_req = 8 * max(1, 4 // out_itemsize)      # sublane grain of the output dtype
    th_cap = max(1, min(Ho, target_tile_m // max(Wo, 1)))
    lo = max(1, th_cap // 2)
    best_key, th = None, th_cap
    for cand in range(th_cap, lo - 1, -1):
        waste = (-Ho) % cand
        key = (waste, 0 if (cand * Wo) % sub_req == 0 else 1, -cand)
        if best_key is None or key < best_key:
            best_key, th = key, cand
    ho_p = pl.cdiv(Ho, th) * th
    flat_out = (th * Wo) % sub_req == 0          # flat 2-D output blocks must be sublane-aligned

    # ---- wrapper glue: NCHW -> NHWC bf16, zero-pad (spatial + optional channel) ----
    # TODO(synk): drop the NCHW<->NHWC transposes / casts if the surrounding model stays NHWC bf16.
    x_nhwc = jnp.transpose(x_nchw, (0, 2, 3, 1)).astype(jnp.bfloat16)
    hin_needed = (ho_p - 1) * stride + dilation * (k - 1) + 1
    pad_bottom = max(pad, hin_needed - H - pad)
    xp = jnp.pad(x_nhwc, ((0, 0), (pad, pad_bottom), (pad, pad), (0, cin_eff - Cin)))
    hp, wp = xp.shape[1], xp.shape[2]

    # ---- fold BatchNorm2d (eval mode) into the conv weight + per-channel shift ----
    inv_std = 1.0 / jnp.sqrt(run_var.astype(jnp.float32) + eps)
    scale = gamma.astype(jnp.float32) * inv_std                        # (Cout,)
    shift = beta.astype(jnp.float32) - run_mean.astype(jnp.float32) * scale
    w = jnp.transpose(weight_oihw.astype(jnp.float32), (2, 3, 1, 0))   # (kh, kw, Cin, Cout)
    w = w * scale[None, None, None, :]
    w = jnp.pad(w, ((0, 0), (0, 0), (0, cin_eff - Cin), (0, coutp - Cout)))
    w = w.reshape(Kdim, coutp).astype(jnp.bfloat16)                    # (k*k*cin_eff, coutp)
    shift_p = jnp.pad(shift, (0, coutp - Cout)).reshape(1, coutp)      # f32 shift

    # ---- VMEM budget (lane/sublane-padded sizes, generation-aware cap) ----
    img_bytes = _vmem_tile_bytes((hp, wp, cin_eff), jnp.bfloat16)
    w_bytes = _vmem_tile_bytes((Kdim, coutp), jnp.bfloat16)
    shift_bytes = _vmem_tile_bytes((1, coutp), jnp.float32)
    out_tile = (_vmem_tile_bytes((th * Wo, coutp), out_dtype) if flat_out
                else _vmem_tile_bytes((th, Wo, coutp), out_dtype))
    tmp_bytes = (_vmem_tile_bytes((th * Wo, Kdim), jnp.bfloat16)
                 + _vmem_tile_bytes((th * Wo, coutp), jnp.float32))
    fixed = 2 * w_bytes + 2 * shift_bytes + 2 * out_tile + tmp_bytes + (2 << 20)

    try:
        phys_vmem = int(pltpu.get_tpu_info().vmem_capacity_bytes)
    except Exception:
        phys_vmem = 64 * 1024 * 1024            # conservative fallback (works on all generations)
    budget = int(phys_vmem * 0.85)              # leave headroom for compiler-internal scratch

    img_buffers = 2
    if fixed + 2 * img_bytes > budget and fixed + img_bytes <= budget:
        img_buffers = 1                         # single-buffer the resident image (re-DMA per batch)
    vmem_limit = int(min(budget, max(32 << 20, fixed + img_buffers * img_bytes)))

    img_kwargs = {}
    if img_buffers == 1:
        img_kwargs = dict(pipeline_mode=pl.Buffered(1))
    in_specs = [
        # whole padded image of batch n; reused (no re-DMA) across row blocks
        pl.BlockSpec((None, hp, wp, cin_eff), lambda n, r: (n, 0, 0, 0), **img_kwargs),
        # BN-folded weights, fully resident, already in fused-K layout
        pl.BlockSpec((Kdim, coutp), lambda n, r: (0, 0)),
        # BN shift
        pl.BlockSpec((1, coutp), lambda n, r: (0, 0)),
    ]
    if flat_out:
        out_shape = jax.ShapeDtypeStruct((N, ho_p * Wo, coutp), out_dtype)
        out_specs = pl.BlockSpec((None, th * Wo, coutp), lambda n, r: (n, r, 0))
    else:
        out_shape = jax.ShapeDtypeStruct((N, ho_p, Wo, coutp), out_dtype)
        out_specs = pl.BlockSpec((None, th, Wo, coutp), lambda n, r: (n, r, 0, 0))

    flops = 2 * N * Ho * Wo * Cout * k * k * Cin
    bytes_accessed = (N * hp * wp * cin_eff * 2 + Kdim * coutp * 2
                      + N * Ho * Wo * Cout * out_itemsize)
    cost = pl.CostEstimate(flops=flops, transcendentals=0, bytes_accessed=int(bytes_accessed))

    kernel = functools.partial(
        _cna_kernel, k=k, stride=stride, dilation=dilation,
        tile_h=th, wo=Wo, pad=pad, has_skip=has_skip)

    out = pl.pallas_call(
        kernel,
        out_shape=out_shape,
        grid_spec=pltpu.PrefetchScalarGridSpec(
            num_scalar_prefetch=0,
            grid=(N, ho_p // th),
            in_specs=in_specs,
            out_specs=out_specs,
        ),
        compiler_params=pltpu.CompilerParams(
            dimension_semantics=("parallel", "parallel"),   # row blocks independent -> v7x 2-TC
            vmem_limit_bytes=vmem_limit),
        cost_estimate=cost,
    )(xp, w, shift_p)

    if flat_out:
        out = out.reshape(N, ho_p, Wo, coutp)
    out = out[:, :Ho, :, :Cout]               # drop padded rows / channels
    return jnp.transpose(out, (0, 3, 1, 2))   # back to NCHW


def _reference(x, w, gamma, beta, mean, var, k, stride, dilation, skip, eps=1e-6):
    padding = math.ceil((k - stride) / 2)
    y = jax.lax.conv_general_dilated(
        x, w, window_strides=(stride, stride),
        padding=((padding, padding), (padding, padding)),
        rhs_dilation=(dilation, dilation),
        dimension_numbers=('NCHW', 'OIHW', 'NCHW'))
    c = lambda v: v.reshape(1, -1, 1, 1)
    y = c(gamma) * (y - c(mean)) / jnp.sqrt(c(var) + eps) + c(beta)
    y = jnp.maximum(y, 0.0)
    if skip and x.shape[1] == w.shape[0]:
        y = y + x
    return y


def _make_params(key, cin, cout, k):
    ks = jax.random.split(key, 5)
    w = jax.random.normal(ks[0], (cout, cin, k, k), jnp.float32) * 0.1
    gamma = jax.random.uniform(ks[1], (cout,), jnp.float32, 0.5, 1.5)
    beta = jax.random.normal(ks[2], (cout,), jnp.float32) * 0.1
    mean = jax.random.normal(ks[3], (cout,), jnp.float32) * 0.1
    var = jax.random.uniform(ks[4], (cout,), jnp.float32, 0.5, 1.5)
    return w, gamma, beta, mean, var


if __name__ == "__main__":
    key = jax.random.PRNGKey(0)
    kx, kp1, kp2 = jax.random.split(key, 3)

    # Example input, NCHW (matches PyTorch convention)
    N, Cin, H, W = 2, 4, 16, 16
    x = jax.random.normal(kx, (N, Cin, H, W), jnp.float32)

    # Config 1: ConvNormAct(4, 8, kernel_size=3)  (skip=False path)
    k1 = 3
    w1, g1, b1, m1, v1 = _make_params(kp1, Cin, 8, k1)
    out1 = conv_norm_act(x, w1, g1, b1, m1, v1, kernel_size=k1, stride=1, skip=False)
    jax.block_until_ready(out1)
    ref1 = _reference(x, w1, g1, b1, m1, v1, k1, 1, 1, False)
    np.testing.assert_allclose(np.asarray(out1.astype(jnp.float32)), np.asarray(ref1),
                               rtol=2e-2, atol=3e-2)

    # Config 2: ConvNormAct(4, 4, kernel_size=3, skip=True)  (residual path)
    k2 = 3
    w2, g2, b2, m2, v2 = _make_params(kp2, Cin, Cin, k2)
    out2 = conv_norm_act(x, w2, g2, b2, m2, v2, kernel_size=k2, stride=1, skip=True)
    jax.block_until_ready(out2)
    ref2 = _reference(x, w2, g2, b2, m2, v2, k2, 1, 1, True)
    np.testing.assert_allclose(np.asarray(out2.astype(jnp.float32)), np.asarray(ref2),
                               rtol=2e-2, atol=3e-2)

    print("KERNEL_OK")
</pallas_src>

<mosaic_0001>
module attributes {stable_mosaic.version = 11 : i64} {
  func.func @_cna_kernel(%arg0: i32, %arg1: i32, %arg2: memref<1x18x18x4xbf16, #tpu.memory_space<vmem>>, %arg3: memref<36x128xbf16, #tpu.memory_space<vmem>>, %arg4: memref<1x128xf32, #tpu.memory_space<vmem>>, %arg5: memref<1x256x128xbf16, #tpu.memory_space<vmem>>) attributes {dimension_semantics = [#tpu.dimension_semantics<parallel>, #tpu.dimension_semantics<parallel>], iteration_bounds = array<i64: 2, 1>, scalar_prefetch = 0 : i64, scratch_operands = 0 : i64, tpu.core_type = #tpu.core_type<tc>, window_params = [{transform_indices = @transform_0, window_bounds = array<i64: 1, 18, 18, 4>}, {pipeline_mode = #tpu.pipeline_mode<synchronous>, transform_indices = @transform_1, window_bounds = array<i64: 36, 128>}, {pipeline_mode = #tpu.pipeline_mode<synchronous>, transform_indices = @transform_2, window_bounds = array<i64: 1, 128>}, {transform_indices = @transform_3, window_bounds = array<i64: 1, 256, 128>}]} {
    %c16_i32 = arith.constant 16 : i32
    %0 = arith.muli %arg1, %c16_i32 : i32
    %1 = tpu.assume_multiple %0, 16 : i32
    %c0_i32 = arith.constant 0 : i32
    %2 = arith.addi %1, %c0_i32 : i32
    %c0 = arith.constant 0 : index
    %3 = arith.index_cast %2 : i32 to index
    %c0_0 = arith.constant 0 : index
    %c0_1 = arith.constant 0 : index
    %4 = vector.load %arg2[%c0, %3, %c0_0, %c0_1] : memref<1x18x18x4xbf16, #tpu.memory_space<vmem>>, vector<1x16x16x4xbf16>
    %5 = vector.shape_cast %4 : vector<1x16x16x4xbf16> to vector<16x16x4xbf16>
    %c0_i32_2 = arith.constant 0 : i32
    %6 = arith.addi %1, %c0_i32_2 : i32
    %c0_3 = arith.constant 0 : index
    %7 = arith.index_cast %6 : i32 to index
    %c1 = arith.constant 1 : index
    %c0_4 = arith.constant 0 : index
    %8 = vector.load %arg2[%c0_3, %7, %c1, %c0_4] : memref<1x18x18x4xbf16, #tpu.memory_space<vmem>>, vector<1x16x16x4xbf16>
    %9 = vector.shape_cast %8 : vector<1x16x16x4xbf16> to vector<16x16x4xbf16>
    %c0_i32_5 = arith.constant 0 : i32
    %10 = arith.addi %1, %c0_i32_5 : i32
    %c0_6 = arith.constant 0 : index
    %11 = arith.index_cast %10 : i32 to index
    %c2 = arith.constant 2 : index
    %c0_7 = arith.constant 0 : index
    %12 = vector.load %arg2[%c0_6, %11, %c2, %c0_7] : memref<1x18x18x4xbf16, #tpu.memory_space<vmem>>, vector<1x16x16x4xbf16>
    %13 = vector.shape_cast %12 : vector<1x16x16x4xbf16> to vector<16x16x4xbf16>
    %c1_i32 = arith.constant 1 : i32
    %14 = arith.addi %1, %c1_i32 : i32
    %c0_8 = arith.constant 0 : index
    %15 = arith.index_cast %14 : i32 to index
    %c0_9 = arith.constant 0 : index
    %c0_10 = arith.constant 0 : index
    %16 = vector.load %arg2[%c0_8, %15, %c0_9, %c0_10] : memref<1x18x18x4xbf16, #tpu.memory_space<vmem>>, vector<1x16x16x4xbf16>
    %17 = vector.shape_cast %16 : vector<1x16x16x4xbf16> to vector<16x16x4xbf16>
    %c1_i32_11 = arith.constant 1 : i32
    %18 = arith.addi %1, %c1_i32_11 : i32
    %c0_12 = arith.constant 0 : index
    %19 = arith.index_cast %18 : i32 to index
    %c1_13 = arith.constant 1 : index
    %c0_14 = arith.constant 0 : index
    %20 = vector.load %arg2[%c0_12, %19, %c1_13, %c0_14] : memref<1x18x18x4xbf16, #tpu.memory_space<vmem>>, vector<1x16x16x4xbf16>
    %21 = vector.shape_cast %20 : vector<1x16x16x4xbf16> to vector<16x16x4xbf16>
    %c1_i32_15 = arith.constant 1 : i32
    %22 = arith.addi %1, %c1_i32_15 : i32
    %c0_16 = arith.constant 0 : index
    %23 = arith.index_cast %22 : i32 to index
    %c2_17 = arith.constant 2 : index
    %c0_18 = arith.constant 0 : index
    %24 = vector.load %arg2[%c0_16, %23, %c2_17, %c0_18] : memref<1x18x18x4xbf16, #tpu.memory_space<vmem>>, vector<1x16x16x4xbf16>
    %25 = vector.shape_cast %24 : vector<1x16x16x4xbf16> to vector<16x16x4xbf16>
    %c2_i32 = arith.constant 2 : i32
    %26 = arith.addi %1, %c2_i32 : i32
    %c0_19 = arith.constant 0 : index
    %27 = arith.index_cast %26 : i32 to index
    %c0_20 = arith.constant 0 : index
    %c0_21 = arith.constant 0 : index
    %28 = vector.load %arg2[%c0_19, %27, %c0_20, %c0_21] : memref<1x18x18x4xbf16, #tpu.memory_space<vmem>>, vector<1x16x16x4xbf16>
    %29 = vector.shape_cast %28 : vector<1x16x16x4xbf16> to vector<16x16x4xbf16>
    %c2_i32_22 = arith.constant 2 : i32
    %30 = arith.addi %1, %c2_i32_22 : i32
    %c0_23 = arith.constant 0 : index
    %31 = arith.index_cast %30 : i32 to index
    %c1_24 = arith.constant 1 : index
    %c0_25 = arith.constant 0 : index
    %32 = vector.load %arg2[%c0_23, %31, %c1_24, %c0_25] : memref<1x18x18x4xbf16, #tpu.memory_space<vmem>>, vector<1x16x16x4xbf16>
    %33 = vector.shape_cast %32 : vector<1x16x16x4xbf16> to vector<16x16x4xbf16>
    %c2_i32_26 = arith.constant 2 : i32
    %34 = arith.addi %1, %c2_i32_26 : i32
    %c0_27 = arith.constant 0 : index
    %35 = arith.index_cast %34 : i32 to index
    %c2_28 = arith.constant 2 : index
    %c0_29 = arith.constant 0 : index
    %36 = vector.load %arg2[%c0_27, %35, %c2_28, %c0_29] : memref<1x18x18x4xbf16, #tpu.memory_space<vmem>>, vector<1x16x16x4xbf16>
    %37 = vector.shape_cast %36 : vector<1x16x16x4xbf16> to vector<16x16x4xbf16>
    %38 = tpu.concatenate %5, %9, %13, %17, %21, %25, %29, %33, %37 in 2 : vector<16x16x4xbf16>, vector<16x16x4xbf16>, vector<16x16x4xbf16>, vector<16x16x4xbf16>, vector<16x16x4xbf16>, vector<16x16x4xbf16>, vector<16x16x4xbf16>, vector<16x16x4xbf16>, vector<16x16x4xbf16> -> vector<16x16x36xbf16>
    %39 = vector.shape_cast %38 : vector<16x16x36xbf16> to vector<256x36xbf16>
    %c0_30 = arith.constant 0 : index
    %c0_31 = arith.constant 0 : index
    %40 = vector.load %arg3[%c0_30, %c0_31] : memref<36x128xbf16, #tpu.memory_space<vmem>>, vector<36x128xbf16>
    %cst = arith.constant dense<0.000000e+00> : vector<256x128xf32>
    %41 = tpu.matmul %39, %40, %cst {dimension_numbers = #tpu.dot_dimension_numbers<[1], [0], [0], [1], [0, 0, 1, 1], [], []>} : vector<256x36xbf16>, vector<36x128xbf16>, vector<256x128xf32> -> vector<256x128xf32>
    %c0_32 = arith.constant 0 : index
    %c0_33 = arith.constant 0 : index
    %42 = vector.load %arg4[%c0_32, %c0_33] : memref<1x128xf32, #tpu.memory_space<vmem>>, vector<1x128xf32>
    %43 = vector.broadcast %42 : vector<1x128xf32> to vector<256x128xf32>
    %44 = arith.addf %41, %43 : vector<256x128xf32>
    %cst_34 = arith.constant 0.000000e+00 : f32
    %45 = vector.broadcast %cst_34 : f32 to vector<256x128xf32>
    %46 = arith.maximumf %44, %45 : vector<256x128xf32>
    %47 = arith.truncf %46 : vector<256x128xf32> to vector<256x128xbf16>
    %c0_35 = arith.constant 0 : index
    %c0_36 = arith.constant 0 : index
    %c0_37 = arith.constant 0 : index
    %48 = vector.load %arg5[%c0_35, %c0_36, %c0_37] : memref<1x256x128xbf16, #tpu.memory_space<vmem>>, vector<1x256x128xbf16>
    %49 = vector.shape_cast %48 : vector<1x256x128xbf16> to vector<256x128xbf16>
    %50 = vector.shape_cast %47 : vector<256x128xbf16> to vector<1x256x128xbf16>
    tpu.vector_store %arg5[%c0_35, %c0_36, %c0_37], %50 {strides = array<i32>} : memref<1x256x128xbf16, #tpu.memory_space<vmem>>, vector<1x256x128xbf16>,
    return
  }
  func.func @transform_0(%arg0: i32, %arg1: i32) -> (i32, i32, i32, i32) {
    %c0_i32 = arith.constant 0 : i32
    %c0_i32_0 = arith.constant 0 : i32
    %c0_i32_1 = arith.constant 0 : i32
    %c0_i32_2 = arith.constant 0 : i32
    return %arg0, %c0_i32, %c0_i32_0, %c0_i32_1 : i32, i32, i32, i32
  }
  func.func @transform_1(%arg0: i32, %arg1: i32) -> (i32, i32) {
    %c0_i32 = arith.constant 0 : i32
    %c0_i32_0 = arith.constant 0 : i32
    %c0_i32_1 = arith.constant 0 : i32
    return %c0_i32, %c0_i32_0 : i32, i32
  }
  func.func @transform_2(%arg0: i32, %arg1: i32) -> (i32, i32) {
    %c0_i32 = arith.constant 0 : i32
    %c0_i32_0 = arith.constant 0 : i32
    %c0_i32_1 = arith.constant 0 : i32
    return %c0_i32, %c0_i32_0 : i32, i32
  }
  func.func @transform_3(%arg0: i32, %arg1: i32) -> (i32, i32, i32) {
    %c0_i32 = arith.constant 0 : i32
    %c0_i32_0 = arith.constant 0 : i32
    return %arg0, %arg1, %c0_i32 : i32, i32, i32
  }
}

</mosaic_0001>

<bundles_post_ra>
// kernel: tpu_custom_call.1
= control target key start
LH: loop header
LB: loop body
LE: loop exit
PB: predicated region body
PF: predicated region fallthrough
CT: control target
= control target key end

     0   :  { %8 = vsyncpa [#allocation3], 0  ;;  %s4915_s0 = inlined_call_operand.vmem [shape: bf16[2,18,18,4], index: 0, kind: input, shape index: {}]   ;;  %s4916_s1 = inlined_call_operand.vmem [shape: bf16[36,128], index: 1, kind: input, shape index: {}]   ;;  %s4917_s2 = inlined_call_operand.vmem [shape: f32[1,128], index: 2, kind: input, shape index: {}]   ;;  %s4918_s3 = inlined_call_operand.hbm [shape: bf16[2,256,128], index: 3, kind: output, shape index: {}]  }
   0x1   :  { %10 = vsyncpa [#allocation3 + $0x1], 0  ;;  %s3524_s12 = smov 0   ;;  %s3526_s13 = smov 0  }
   0x2   :  { %s3528_s14 = smov 0   ;;  %s3530_s15 = smov 0  }
   0x3   :  { %s3532_s16 = smov 0   ;;  %s3534_s17 = smov 0  }
   0x4 LB: > { %s2675_s18 = sadd.s32 4294967295, %s3492_s17   ;;  %s2676_s19 = sadd.s32 4294967294, %s3492_s17   ;;  %s3492_s17 = sphi %s3534_s17, %s16_s17   ;;  %s3488_s16 = sphi %s3532_s16, %s4940_s16   ;;  %s3484_s15 = sphi %s3530_s15, %s4939_s15   ;;  %s3480_s14 = sphi %s3528_s14, %s4938_s14   ;;  %s3476_s13 = sphi %s3526_s13, %s4937_s13   ;;  %s3472_s12 = sphi %s3524_s12, %s4936_s12  }
   0x5   : > { %s28_s20 = sadd.s32 1, %s3488_s16  ;;  %s105_s21 = sadd.s32 1, %s3480_s14 }
   0x6   : > { %p30_p0 = scmp.ge.s32.totalorder %s28_s20, 2  ;;  %p115_p1 = scmp.ne.s32.totalorder %s3480_s14, %s3476_s13 }
   0x7   : > { %p116_p2 = scmp.eq.s32.totalorder %s2675_s18, 1  ;;  %p121_p3 = scmp.ne.s32.totalorder %s3476_s13, %s3472_s12 }
   0x8   : > { %s4942_s20 = smov (%p30_p0, %s28_s20), 0  ;;  %p122_p5 = scmp.eq.s32.totalorder %s2676_s19, 1 }
   0x9   : > { %p3564_p4 = por %p116_p2, %p115_p1  ;;  %s100_s23 = ssub.s32 %s3488_s16, %s4942_s20 }
   0xa   : > { %p2679_p6 = scmp.ge.s32.totalorder %s3492_s17, 1  ;;  %p103_p7 = scmp.eq.s32.totalorder %s100_s23, 0 }
   0xb   : > { %p3571_p8 = por %p122_p5, %p121_p3  ;;  %p154_p9 = scmp.lt.s32.totalorder %s3492_s17, 3 }
   0xc   : > { %s3577_s25 = scalar_select %p103_p7, %s3480_s14, %s105_s21  }
   0xd   : > { %p155_p10 = pnand %p2679_p6, %p154_p9 }
   0xf   : > { %158 = sbr.rel (%p155_p10) target bundleno = 620 (0x26c), region = 32 }
  0x14   : > { %p178_p11 = scmp.lt.s32.totalorder %s3484_s15, 1  ;;  %s3494_s4 = smov 12   ;;  %vm790_vm0 = vcmask 1046528   ;;  %vm517_vm1 = vsmask.f32 7424  ;;  %vm2219_vm2 = vcmask 1041408  }
  0x15   : > { %s3495_s5 = smov 8   ;;  %s3496_s6 = smov 4   ;;  %vm1895_vm3 = vcmask 31744   ;;  %vm1928_vm4 = vcmask 64512   ;;  %vm1961_vm5 = vcmask 97280   ;;  %vm1994_vm6 = vcmask 130048  }
  0x16   : > { %s179_s26 = scalar_select %p178_p11, %s3484_s15, 1  ;;  %vm2027_vm7 = vcmask 162816   ;;  %vm2060_vm8 = vcmask 195584   ;;  %vm2093_vm9 = vcmask 228352   ;;  %vm2126_vm10 = vcmask 261120  }
  0x17   : > { %s3497_s7 = smov 16   ;;  %s3498_s8 = smov 20   ;;  %vm2186_vm11 = vcmask 293888  }
  0x18   : > { %s3204_s27 = smul.u32 216, %s179_s26  ;;  %s3499_s9 = smov 24  }
  0x19   : > { %s3500_s10 = smov 28   ;;  %s3501_s11 = smov 32  }
  0x1a   : > { %s3584_s30 = scalar_lea.vmem %s4915_s0, %s3204_s27  ;;  %s3502_s19 = smov [#allocation2]  }
  0x1b   : > { %v2698_v0 = vld [vmem:[%s3584_s30 + $0x6c] sm:$0xf]  ;;  %v3588_v1 = vld [vmem:[%s3584_s30 + $0x70] sm:$0xf]  ;;  %v206_v6 = vld [vmem:[%s3584_s30 + $0x64] sm:$0xf] }
  0x1c   : > { %v3591_v2 = vcombine.low %v2698_v0, %v3588_v1  ;;  %v2682_v3 = vld [vmem:[%s3584_s30 + $0xc] sm:$0xf]  ;;  %v3595_v4 = vld [vmem:[%s3584_s30 + $0x10] sm:$0xf]  ;;  %v245_v7 = vld [vmem:[%s3584_s30 + $0x60] sm:$0xe] }
  0x1d   : > { %v3598_v5 = vcombine.low %v2682_v3, %v3595_v4  ;;  %v3605_v8 = vld [vmem:[%s3584_s30 + $0x68] ss:$0 sps:$4 sm:$0x11]   ;;  %v2850_v9 = vcombine.low %v245_v7, %v206_v6  ;;  %v205_v10 = vld [vmem:[%s3584_s30 + $0x60] sm:$0xf]  ;;  %s3420_s21 = sshll.u32 %s3502_s19, 4  ;;  %s3421_s21 = int_to_ptr.vmem [resolvable:$false] %s3420_s21 }
  0x1e   : > { %967 = vrot.lane.b32.xlu1 %v3591_v2, %s3494_s4  ;;  %v1130_v11 = vshll.u32 %v3591_v2, 16  ;;  %v190_v12 = vld [vmem:[%s3584_s30 + $0x4] sm:$0xf]  ;;  %v816_v14 = vrot.slane %v3605_v8, 1  ;;  %v237_v15 = vld [vmem:[%s3584_s30] sm:$0xe]  ;;  %v3616_v18 = vcombine.low %v205_v10, %v206_v6 }
  0x1f   : > { %951 = vrot.lane.b32.xlu0 %v3598_v5, %s3494_s4  ;;  %v815_v13 = vrot.slane %v2850_v9, 1  ;;  %v189_v16 = vld [vmem:[%s3584_s30] sm:$0xf]  ;;  %v1034_v17 = vshll.u32 %v3598_v5, 16  ;;  %v2842_v20 = vcombine.low %v237_v15, %v190_v12  ;;  %v207_v21 = vld [vmem:[%s3584_s30 + $0x6c] sm:$0xf] }
  0x20   : > { %v3276_v19 = vld [vmem:[%s3584_s30 + $0x8] ss:$0 sps:$4 sm:$0x11]   ;;  %v3621_v23 = vcombine.low %v189_v16, %v190_v12  ;;  %v208_v24 = vld [vmem:[%s3584_s30 + $0x70] sm:$0xf]  ;;  %v615_v30 = vshrl.u32 %v3616_v18, 16 }
  0x21   : > { %v817_v22 = vsel %vm790_vm0, %v815_v13, %v816_v14  ;;  %v246_v25 = vld [vmem:[%s3584_s30 + $0x6c] sm:$0xe]  ;;  %v791_v26 = vrot.slane %v2842_v20, 1  ;;  %v792_v27 = vrot.slane %v3276_v19, 1  ;;  %v3628_v31 = vcombine.low %v207_v21, %v208_v24  ;;  %v192_v33 = vld [vmem:[%s3584_s30 + $0x10] sm:$0xf] }
  0x22   : > { %855 = vrot.lane.b32.xlu1 %v817_v22, %s3495_s5  ;;  %v3280_v28 = vld [vmem:[%s3584_s30 + $0x74] ss:$0 sps:$4 sm:$0x11]   ;;  %v2851_v29 = vcombine.low %v246_v25, %v208_v24  ;;  %v191_v32 = vld [vmem:[%s3584_s30 + $0xc] sm:$0xf]  ;;  %v519_v41 = vshrl.u32 %v3621_v23, 16 }
  0x23   : > { %v793_v34 = vsel %vm790_vm0, %v791_v26, %v792_v27  ;;  %v819_v36 = vrot.slane %v3280_v28, 1  ;;  %v238_v37 = vld [vmem:[%s3584_s30 + $0xc] sm:$0xe]  ;;  %v3634_v38 = vcombine.low %v191_v32, %v192_v33  ;;  %v3283_v39 = vld [vmem:[%s3584_s30 + $0x14] ss:$0 sps:$4 sm:$0x11]  }
  0x24   : > { %v818_v35 = vrot.slane %v2851_v29, 1  ;;  %839 = vrot.lane.b32.xlu0 %v793_v34, %s3495_s5  ;;  %v2843_v40 = vcombine.low %v238_v37, %v192_v33  ;;  %v521_v42 = vshll.u32 %v3621_v23, 16  ;;  %v526_v43 = vshll.u32 %v3276_v19, 16  ;;  %v2700_v52 = vld [vmem:[%s3584_s30 + $0x78] sm:$0xf]  ;;  %s3422_s23 = scalar_lea.vmem %s3421_s21, 4096 }
  0x25   : > { %v531_v45 = vshrl.u32 %v3634_v38, 16  ;;  %v533_v46 = vshll.u32 %v3634_v38, 16  ;;  %v627_v47 = vshrl.u32 %v3628_v31, 16  ;;  %v795_v49 = vrot.slane %v3283_v39, 1  ;;  %v3648_v57 = vld [vmem:[%s3584_s30 + $0x7c] sm:$0xf] }
  0x26   : > { %v820_v44 = vsel %vm790_vm0, %v818_v35, %v819_v36  ;;  %v794_v48 = vrot.slane %v2843_v40, 1  ;;  %v538_v50 = vshll.u32 %v3283_v39, 16  ;;  %v523_v51 = vrot.slane %v521_v42, 1  ;;  %v2684_v62 = vld [vmem:[%s3584_s30 + $0x18] sm:$0xf] }
  0x27   : > { %857 = vrot.lane.b32.xlu1 %v820_v44, %s3495_s5  ;;  %v535_v53 = vrot.slane %v533_v46, 1  ;;  %v528_v54 = vrot.slane %v526_v43, 1  ;;  %v629_v55 = vshll.u32 %v3628_v31, 16  ;;  %v634_v56 = vshll.u32 %v3280_v28, 16  ;;  %v3654_v63 = vld [vmem:[%s3584_s30 + $0x1c] sm:$0xf] }
  0x28   : > { %v796_v58 = vsel %vm790_vm0, %v794_v48, %v795_v49  ;;  %v540_v59 = vrot.slane %v538_v50, 1  ;;  %v524_v60 = vor.u32 %v523_v51, %v519_v41  ;;  %v617_v61 = vshll.u32 %v3616_v18, 16  ;;  %v3661_v13 = vld [vmem:[%s3584_s30 + $0x74] ss:$0 sps:$4 sm:$0x11]  }
  0x29   : > { %841 = vrot.lane.b32.xlu0 %v796_v58, %s3495_s5  ;;  %v536_v0 = vor.u32 %v535_v53, %v531_v45  ;;  %v631_v3 = vrot.slane %v629_v55, 1  ;;  %v636_v6 = vrot.slane %v634_v56, 1  ;;  %v622_v7 = vshll.u32 %v3605_v8, 16  ;;  %v3666_v20 = vld [vmem:[%s3584_s30 + $0x14] ss:$0 sps:$4 sm:$0x11]  }
  0x2a   : > { %v529_v9 = vsel %vm517_vm1, %v524_v60, %v528_v54  ;;  %v619_v10 = vrot.slane %v617_v61, 1  ;;  %v2867_v12 = vcombine.low %v2700_v52, %v3648_v57  ;;  %v2859_v19 = vcombine.low %v2684_v62, %v3654_v63  ;;  %v3673_v24 = vld [vmem:[%s3584_s30 + $0x80] ss:$0 sps:$4 sm:$0x11]   ;;  %v2738_v35 = vld [vmem:[%s3584_s30 + $0x6c] sm:$0xe] }
  0x2b   : > { %v541_v14 = vsel %vm517_vm1, %v536_v0, %v540_v59  ;;  %v632_v15 = vor.u32 %v631_v3, %v627_v47  ;;  %v624_v16 = vrot.slane %v622_v7, 1  ;;  %v1128_v21 = vshrl.u32 %v3591_v2, 16  ;;  %v2730_v43 = vld [vmem:[%s3584_s30 + $0xc] sm:$0xe]  ;;  %v2739_v45 = vld [vmem:[%s3584_s30 + $0x78] sm:$0xe] }
  0x2c   : > { %712 = vrot.lane.b32.xlu1 %v541_v14, %s3496_s6  ;;  %v620_v8 = vor.u32 %v619_v10, %v615_v30  ;;  %v1132_v22 = vrot.slane %v1130_v11, 1  ;;  %v1142_v26 = vshll.u32 %v2867_v12, 16  ;;  %v1135_v27 = vshll.u32 %v3661_v13, 16  ;;  %v3684_v11 = vld [vmem:[%s3584_s30 + $0x20] ss:$0 sps:$4 sm:$0x11]  }
  0x2d   : > { %710 = vrot.lane.b32.xlu0 %v529_v9, %s3496_s6  ;;  %v637_v25 = vsel %vm517_vm1, %v632_v15, %v636_v6  ;;  %v1032_v28 = vshrl.u32 %v3598_v5, 16  ;;  %v1046_v30 = vshll.u32 %v2859_v19, 16  ;;  %v1036_v32 = vrot.slane %v1034_v17, 1  ;;  %v2731_v50 = vld [vmem:[%s3584_s30 + $0x18] sm:$0xe] }
  0x2e   : > { %v625_v29 = vsel %vm517_vm1, %v620_v8, %v624_v16  ;;  %v1039_v2 = vshll.u32 %v3666_v20, 16  ;;  %v1133_v33 = vor.u32 %v1132_v22, %v1128_v21  ;;  %v1137_v34 = vrot.slane %v1135_v27, 1  ;;  %v2762_v55 = vld [vmem:[%s3584_s30 + $0x78] sm:$0xf]  ;;  %v3704_v56 = vld [vmem:[%s3584_s30 + $0x7c] sm:$0xf] }
  0x2f   : > { %v1037_v36 = vor.u32 %v1036_v32, %v1032_v28  ;;  %v1140_v37 = vshrl.u32 %v2867_v12, 16  ;;  %v1144_v39 = vrot.slane %v1142_v26, 1  ;;  %v1147_v5 = vshll.u32 %v3673_v24, 16  ;;  %v2746_v3 = vld [vmem:[%s3584_s30 + $0x18] sm:$0xf] }
  0x30   : > { %728 = vrot.lane.b32.xlu1 %v637_v25, %s3496_s6  ;;  %v1041_v17 = vrot.slane %v1039_v2, 1  ;;  %v1044_v40 = vshrl.u32 %v2859_v19, 16  ;;  %v1048_v41 = vrot.slane %v1046_v30, 1  ;;  %v1051_v42 = vshll.u32 %v3684_v11, 16  ;;  %v3715_v6 = vld [vmem:[%s3584_s30 + $0x1c] sm:$0xf] }
  0x31   : > { %726 = vrot.lane.b32.xlu0 %v625_v29, %s3496_s6  ;;  %v2898_v44 = vcombine.low %v2738_v35, %v3588_v1  ;;  %v1138_v46 = vsel %vm517_vm1, %v1133_v33, %v1137_v34  ;;  %v1145_v47 = vor.u32 %v1144_v39, %v1140_v37  ;;  %v1149_v48 = vrot.slane %v1147_v5, 1  ;;  %v2748_v16 = vld [vmem:[%s3584_s30 + $0x24] sm:$0xf]  ;;  %v3735_v21 = vld [vmem:[%s3584_s30 + $0x80] ss:$0 sps:$4 sm:$0x11]  }
  0x32   : > { %v2890_v49 = vcombine.low %v2730_v43, %v3595_v4  ;;  %v1042_v51 = vsel %vm517_vm1, %v1037_v36, %v1041_v17  ;;  %v1049_v52 = vor.u32 %v1048_v41, %v1044_v40  ;;  %v1053_v53 = vrot.slane %v1051_v42, 1  ;;  %v3742_v27 = vld [vmem:[%s3584_s30 + $0x20] ss:$0 sps:$4 sm:$0x11]   ;;  %v209_v37 = vld [vmem:[%s3584_s30 + $0x78] sm:$0xf] }
  0x33   : > { %v1327_v1 = vrot.slane %v2898_v44, 1  ;;  %v1328_v54 = vrot.slane %v3661_v13, 1  ;;  %v2899_v58 = vcombine.low %v2739_v45, %v3648_v57  ;;  %v2891_v4 = vcombine.low %v2731_v50, %v3654_v63  ;;  %v2764_v63 = vld [vmem:[%s3584_s30 + $0x84] sm:$0xf]  ;;  %v3724_v13 = vld [vmem:[%s3584_s30 + $0x88] sm:$0xf] }
  0x34   : > { %969 = vrot.lane.b32.xlu1 %v2867_v12, %s3494_s4  ;;  %v1150_v59 = vsel %vm517_vm1, %v1145_v47, %v1149_v48  ;;  %v1054_v60 = vsel %vm517_vm1, %v1049_v52, %v1053_v53  ;;  %v1303_v61 = vrot.slane %v2890_v49, 1  ;;  %v1304_v62 = vrot.slane %v3666_v20, 1  ;;  %v3751_v34 = vld [vmem:[%s3584_s30 + $0x2c] ss:$0 sps:$4 sm:$0x11]  }
  0x35   : > { %953 = vrot.lane.b32.xlu0 %v2859_v19, %s3494_s4  ;;  %v2914_v0 = vcombine.low %v2762_v55, %v3704_v56  ;;  %v1329_v57 = vsel %vm790_vm0, %v1327_v1, %v1328_v54  ;;  %v1330_v7 = vrot.slane %v2899_v58, 1  ;;  %v1331_v9 = vrot.slane %v3673_v24, 1  ;;  %v3730_v19 = vld [vmem:[%s3584_s30 + $0x28] sm:$0xf]  ;;  %v3756_v39 = vld [vmem:[%s3584_s30 + $0x7c] sm:$0xf] }
  0x36   : > { %v1306_v10 = vrot.slane %v2891_v4, 1  ;;  %v1307_v12 = vrot.slane %v3684_v11, 1  ;;  %v1305_v14 = vsel %vm790_vm0, %v1303_v61, %v1304_v62  ;;  %v2906_v15 = vcombine.low %v2746_v3, %v3715_v6  ;;  %v3747_v11 = vld [vmem:[%s3584_s30 + $0x8c] ss:$0 sps:$4 sm:$0x11]  }
  0x37   : > { %v1642_v20 = vshll.u32 %v2914_v0, 16  ;;  %v2915_v8 = vcombine.low %v2764_v63, %v3724_v13  ;;  %v1332_v22 = vsel %vm790_vm0, %v1330_v7, %v1331_v9  ;;  %v2907_v24 = vcombine.low %v2748_v16, %v3730_v19  ;;  %v193_v17 = vld [vmem:[%s3584_s30 + $0x18] sm:$0xf]  ;;  %v3760_v40 = vld [vmem:[%s3584_s30 + $0x1c] sm:$0xf] }
  0x38   : > { %1239 = vrot.lane.b32.xlu1 %v1138_v46, %s3497_s7  ;;  %v1308_v25 = vsel %vm790_vm0, %v1306_v10, %v1307_v12  ;;  %v1546_v26 = vshll.u32 %v2906_v15, 16  ;;  %v1640_v28 = vshrl.u32 %v2914_v0, 16  ;;  %v1647_v32 = vshll.u32 %v3735_v21, 16  ;;  %v2802_v41 = vld [vmem:[%s3584_s30 + $0x78] sm:$0xe] }
  0x39   : > { %1223 = vrot.lane.b32.xlu0 %v1042_v51, %s3497_s7  ;;  %v1644_v29 = vrot.slane %v1642_v20, 1  ;;  %v1654_v30 = vshll.u32 %v2915_v8, 16  ;;  %v1544_v2 = vshrl.u32 %v2906_v15, 16  ;;  %v1558_v33 = vshll.u32 %v2907_v24, 16  ;;  %v2794_v46 = vld [vmem:[%s3584_s30 + $0x18] sm:$0xe] }
  0x3a   : > { %v1548_v35 = vrot.slane %v1546_v26, 1  ;;  %v1551_v36 = vshll.u32 %v3742_v27, 16  ;;  %v1649_v42 = vrot.slane %v1647_v32, 1  ;;  %v1652_v43 = vshrl.u32 %v2915_v8, 16  ;;  %v195_v9 = vld [vmem:[%s3584_s30 + $0x24] sm:$0xf] }
  0x3b   : > { %v1645_v5 = vor.u32 %v1644_v29, %v1640_v28  ;;  %v1656_v44 = vrot.slane %v1654_v30, 1  ;;  %v1659_v45 = vshll.u32 %v3747_v11, 16  ;;  %v1556_v47 = vshrl.u32 %v2907_v24, 16  ;;  %v3778_v4 = vld [vmem:[%s3584_s30 + $0x80] ss:$0 sps:$4 sm:$0x11]  }
  0x3c   : > { %1241 = vrot.lane.b32.xlu1 %v1150_v59, %s3497_s7  ;;  %v1560_v48 = vrot.slane %v1558_v33, 1  ;;  %v1563_v49 = vshll.u32 %v3751_v34, 16  ;;  %v3769_v50 = vcombine.low %v209_v37, %v3756_v39  ;;  %v1549_v51 = vor.u32 %v1548_v35, %v1544_v2  ;;  %v3795_v10 = vld [vmem:[%s3584_s30 + $0x28] sm:$0xf]  ;;  %v2803_v12 = vld [vmem:[%s3584_s30 + $0x84] sm:$0xe] }
  0x3d   : > { %1225 = vrot.lane.b32.xlu0 %v1054_v60, %s3497_s7  ;;  %v1553_v52 = vrot.slane %v1551_v36, 1  ;;  %v3772_v53 = vcombine.low %v193_v17, %v3760_v40  ;;  %v2946_v1 = vcombine.low %v2802_v41, %v3704_v56  ;;  %v2938_v54 = vcombine.low %v2794_v46, %v3715_v6  ;;  %v3784_v56 = vld [vmem:[%s3584_s30 + $0x20] ss:$0 sps:$4 sm:$0x11]   ;;  %v211_v6 = vld [vmem:[%s3584_s30 + $0x84] sm:$0xf] }
  0x3e   : > { %v1657_v55 = vor.u32 %v1656_v44, %v1652_v43  ;;  %v1661_v58 = vrot.slane %v1659_v45, 1  ;;  %v1650_v59 = vsel %vm517_vm1, %v1645_v5, %v1649_v42  ;;  %v1561_v60 = vor.u32 %v1560_v48, %v1556_v47  ;;  %v3820_v36 = vld [vmem:[%s3584_s30 + $0x8c] ss:$0 sps:$4 sm:$0x11]  }
  0x3f   : > { %v1565_v61 = vrot.slane %v1563_v49, 1  ;;  %v641_v62 = vshll.u32 %v3769_v50, 16  ;;  %v545_v3 = vshll.u32 %v3772_v53, 16  ;;  %v1839_v63 = vrot.slane %v2946_v1, 1 }
  0x40   : > { %1367 = vrot.lane.b32.xlu1 %v1329_v57, %s3498_s8  ;;  %v3790_v57 = vld [vmem:[%s3584_s30 + $0x88] sm:$0xf]  ;;  %v1840_v7 = vrot.slane %v3735_v21, 1  ;;  %v1816_v16 = vrot.slane %v3742_v27, 1  ;;  %v646_v20 = vshll.u32 %v3778_v4, 16  ;;  %v543_v26 = vshrl.u32 %v3772_v53, 16 }
  0x41   : > { %1351 = vrot.lane.b32.xlu0 %v1305_v14, %s3498_s8  ;;  %v1662_v14 = vsel %vm517_vm1, %v1657_v55, %v1661_v58  ;;  %v1566_v21 = vsel %vm517_vm1, %v1561_v60, %v1565_v61  ;;  %v547_v28 = vrot.slane %v545_v3, 1  ;;  %v550_v27 = vshll.u32 %v3784_v56, 16 }
  0x42   : > { %v3812_v29 = vcombine.low %v195_v9, %v3795_v10  ;;  %v2947_v30 = vcombine.low %v2803_v12, %v3724_v13  ;;  %v648_v2 = vrot.slane %v646_v20, 1  ;;  %v1841_v33 = vsel %vm790_vm0, %v1839_v63, %v1840_v7  ;;  %v3825_v13 = vld [vmem:[%s3584_s30 + $0x2c] ss:$0 sps:$4 sm:$0x11]   ;;  %v240_v63 = vld [vmem:[%s3584_s30 + $0x24] sm:$0xe] }
  0x43   : > { %v548_v17 = vor.u32 %v547_v28, %v543_v26  ;;  %v552_v41 = vrot.slane %v550_v27, 1  ;;  %v1843_v43 = vrot.slane %v3747_v11, 1  ;;  %v1819_v45 = vrot.slane %v3751_v34, 1  ;;  %v239_v34 = vld [vmem:[%s3584_s30 + $0x18] sm:$0xe] }
  0x44   : > { %1369 = vrot.lane.b32.xlu1 %v1332_v22, %s3498_s8  ;;  %v639_v22 = vshrl.u32 %v3769_v50, 16  ;;  %4926 = vst [vmem:[#allocation5_spill] sm:$0xff] %v3812_v29  ;;  %v1842_v42 = vrot.slane %v2947_v30, 1  ;;  %v658_v49 = vshll.u32 %v3820_v36, 16  ;;  %v555_v1 = vshrl.u32 %v3812_v29, 16 }
  0x45   : > { %1353 = vrot.lane.b32.xlu0 %v1308_v25, %s3498_s8  ;;  %v3807_v25 = vcombine.low %v211_v6, %v3790_v57  ;;  %v2844_v61 = vcombine.low %v239_v34, %v3760_v40  ;;  %v822_v7 = vrot.slane %v3778_v4, 1  ;;  %v798_v9 = vrot.slane %v3784_v56, 1  ;;  %v2686_v56 = vld [vmem:[%s3584_s30 + $0x24] sm:$0xf]  ;;  %v2704_v28 = vld [vmem:[%s3584_s30 + $0x90] sm:$0xf] }
  0x46   : > { %v1844_v55 = vsel %vm790_vm0, %v1842_v42, %v1843_v43  ;;  %v2845_v4 = vcombine.low %v240_v63, %v3795_v10  ;;  %v3872_v10 = vld [vmem:[%s3584_s30 + $0x94] sm:$0xf] }
  0x47   : > { %v653_v37 = vshll.u32 %v3807_v25, 16  ;;  %v651_v47 = vshrl.u32 %v3807_v25, 16 }
  0x48   : > { %1479 = vrot.lane.b32.xlu1 %v2914_v0, %s3499_s9  ;;  %v1554_v0 = vsel %vm517_vm1, %v1549_v51, %v1553_v52  ;;  %v247_v51 = vld [vmem:[%s3584_s30 + $0x78] sm:$0xe]  ;;  %v553_v52 = vsel %vm517_vm1, %v548_v17, %v552_v41  ;;  %v800_v30 = vrot.slane %v2845_v4, 1  ;;  %v3886_v41 = vld [vmem:[%s3584_s30 + $0x8c] ss:$0 sps:$4 sm:$0x11]  }
  0x49   : > { %1463 = vrot.lane.b32.xlu0 %v2906_v15, %s3499_s9  ;;  %v1815_v15 = vrot.slane %v2938_v54, 1  ;;  %v655_v48 = vrot.slane %v653_v37, 1  ;;  %v562_v54 = vshll.u32 %v3825_v13, 16  ;;  %v2852_v60 = vcombine.low %v247_v51, %v3756_v39  ;;  %v2733_v4 = vld [vmem:[%s3584_s30 + $0x30] sm:$0xe] }
  0x4b   : > { %v1817_v5 = vsel %vm790_vm0, %v1815_v15, %v1816_v16  ;;  %v656_v58 = vor.u32 %v655_v48, %v651_v47  ;;  %v564_v6 = vrot.slane %v562_v54, 1  ;;  %v821_v40 = vrot.slane %v2852_v60, 1  ;;  %v2702_v15 = vld [vmem:[%s3584_s30 + $0x84] sm:$0xf]  ;;  %v3856_v16 = vld [vmem:[%s3584_s30 + $0x88] sm:$0xf] }
  0x4c   : > { %1481 = vrot.lane.b32.xlu1 %v2915_v8, %s3499_s9  ;;  %v2795_v8 = vld [vmem:[%s3584_s30 + $0x24] sm:$0xe]  ;;  %v1159_v47 = vshll.u32 %v3886_v41, 16 }
  0x4d   : > { %1465 = vrot.lane.b32.xlu0 %v2907_v24, %s3499_s9  ;;  %v643_v24 = vrot.slane %v641_v62, 1  ;;  %v2939_v32 = vcombine.low %v2795_v8, %v3730_v19  ;;  %v557_v19 = vshll.u32 %v3812_v29, 16  ;;  %v248_v62 = vld [vmem:[%s3584_s30 + $0x84] sm:$0xe]  ;;  %v3862_v8 = vld [vmem:[%s3584_s30 + $0x28] sm:$0xf] }
  0x4e   : > { %v2853_v12 = vcombine.low %v248_v62, %v3790_v57  ;;  %v2860_v26 = vcombine.low %v2686_v56, %v3862_v8  ;;  %v1161_v54 = vrot.slane %v1159_v47, 1  ;;  %v3365_v47 = vld [vmem:[%s4916_s1 + $0x10] ss:$0 sps:$4 sm:$0x33]   ;;  %v201_v29 = vld [vmem:[%s3584_s30 + $0x48] sm:$0xf] }
  0x4f   : > { %v644_v35 = vor.u32 %v643_v24, %v639_v22  ;;  %v1818_v44 = vrot.slane %v2939_v32, 1  ;;  %v559_v11 = vrot.slane %v557_v19, 1  ;;  %v2868_v22 = vcombine.low %v2702_v15, %v3856_v16  ;;  %v3890_v19 = vld [vmem:[%s3584_s30 + $0x2c] ss:$0 sps:$4 sm:$0x11]   ;;  %3202 = vmatprep.subr.msk.bf16.mxu0 %vm2219_vm2, %v3365_v47  ;;  %3203 = vmatprep.subr.msk.bf16.mxu1 %vm2219_vm2, %v3365_v47 }
  0x50   : > { %1751 = vrot.lane.b32.xlu1 %v1650_v59, %s3500_s10  ;;  %v660_v59 = vrot.slane %v658_v49, 1  ;;  %v824_v57 = vrot.slane %v2853_v12, 1  ;;  %v823_v24 = vsel %vm790_vm0, %v821_v40, %v822_v7  ;;  %v801_v32 = vrot.slane %v3825_v13, 1  ;;  %v3896_v49 = vld [vmem:[%s3584_s30 + $0x98] ss:$0 sps:$4 sm:$0x11]  }
  0x51   : > { %1735 = vrot.lane.b32.xlu0 %v1554_v0, %s3500_s10  ;;  %v649_v46 = vsel %vm517_vm1, %v644_v35, %v648_v2  ;;  %v1820_v0 = vsel %vm790_vm0, %v1818_v44, %v1819_v45  ;;  %v560_v3 = vor.u32 %v559_v11, %v555_v1  ;;  %v2688_v2 = vld [vmem:[%s3584_s30 + $0x30] sm:$0xf]  ;;  %v1154_v35 = vshll.u32 %v2868_v22, 16 }
  0x52   : > { %v661_v39 = vsel %vm517_vm1, %v656_v58, %v660_v59  ;;  %v802_v13 = vsel %vm790_vm0, %v800_v30, %v801_v32  ;;  %v1152_v43 = vshrl.u32 %v2868_v22, 16  ;;  %v1056_v45 = vshrl.u32 %v2860_v26, 16  ;;  %v2740_v59 = vld [vmem:[%s3584_s30 + $0x84] sm:$0xe]  ;;  %v2750_v30 = vld [vmem:[%s3584_s30 + $0x30] sm:$0xf] }
  0x53   : > { %v565_v20 = vsel %vm517_vm1, %v560_v3, %v564_v6  ;;  %v1156_v44 = vrot.slane %v1154_v35, 1  ;;  %v1063_v51 = vshll.u32 %v3890_v19, 16  ;;  %v1171_v58 = vshll.u32 %v3896_v49, 16  ;;  %v2732_v3 = vld [vmem:[%s3584_s30 + $0x24] sm:$0xe] }
  0x54   : > { %1753 = vrot.lane.b32.xlu1 %v1662_v14, %s3500_s10  ;;  %v797_v14 = vrot.slane %v2844_v61, 1  ;;  %v2741_v6 = vld [vmem:[%s3584_s30 + $0x90] sm:$0xe]  ;;  %v2900_v63 = vcombine.low %v2740_v59, %v3856_v16  ;;  %v3931_v32 = vld [vmem:[%s3584_s30 + $0x34] sm:$0xf] }
  0x55   : > { %1737 = vrot.lane.b32.xlu0 %v1566_v21, %s3500_s10  ;;  %v825_v21 = vrot.slane %v3820_v36, 1  ;;  %v2869_v36 = vcombine.low %v2704_v28, %v3872_v10  ;;  %v1157_v1 = vor.u32 %v1156_v44, %v1152_v43  ;;  %v1065_v60 = vrot.slane %v1063_v51, 1  ;;  %v2768_v35 = vld [vmem:[%s3584_s30 + $0x9c] sm:$0xf] }
  0x56   : > { %v799_v27 = vsel %vm790_vm0, %v797_v14, %v798_v9  ;;  %v1173_v12 = vrot.slane %v1171_v58, 1  ;;  %v1333_v56 = vrot.slane %v2900_v63, 1  ;;  %v1310_v28 = vrot.slane %v3890_v19, 1  ;;  %v3961_v51 = vld [vmem:[%s3584_s30 + $0x38] ss:$0 sps:$4 sm:$0x11]  }
  0x57   : > { %v826_v37 = vsel %vm790_vm0, %v824_v57, %v825_v21  ;;  %v1166_v42 = vshll.u32 %v2869_v36, 16  ;;  %v1164_v11 = vshrl.u32 %v2869_v36, 16  ;;  %v1162_v7 = vsel %vm517_vm1, %v1157_v1, %v1161_v54  ;;  %v2766_v57 = vld [vmem:[%s3584_s30 + $0x90] sm:$0xf]  ;;  %v3923_v21 = vld [vmem:[%s3584_s30 + $0x94] sm:$0xf] }
  0x58   : > { %1879 = vrot.lane.b32.xlu1 %v1841_v33, %s3501_s11  ;;  %v3878_v33 = vld [vmem:[%s3584_s30 + $0x34] sm:$0xf]  ;;  %v2908_v19 = vcombine.low %v2750_v30, %v3931_v32  ;;  %v3964_v1 = vld [vmem:[%s3584_s30 + $0xa4] ss:$0 sps:$4 sm:$0x11]  }
  0x59   : > { %1863 = vrot.lane.b32.xlu0 %v1817_v5, %s3501_s11  ;;  %v1058_v5 = vshll.u32 %v2860_v26, 16  ;;  %v2861_v17 = vcombine.low %v2688_v2, %v3878_v33  ;;  %v2916_v2 = vcombine.low %v2766_v57, %v3923_v21  ;;  %v213_v63 = vld [vmem:[%s3584_s30 + $0x90] sm:$0xf] }
  0x5b   : > { %v1060_v48 = vrot.slane %v1058_v5, 1  ;;  %v1068_v61 = vshrl.u32 %v2861_v17, 16  ;;  %v3943_v5 = vld [vmem:[%s3584_s30 + $0x40] sm:$0xf]  ;;  %v1666_v43 = vshll.u32 %v2916_v2, 16 }
  0x5c   : > { %730 = vrot.lane.b32.xlu1 %v649_v46, %s3496_s6  ;;  %v1070_v46 = vshll.u32 %v2861_v17, 16 }
  0x5d   : > { %714 = vrot.lane.b32.xlu0 %v553_v52, %s3496_s6  ;;  %v3900_v52 = vld [vmem:[%s3584_s30 + $0x38] ss:$0 sps:$4 sm:$0x11]   ;;  %v1061_v34 = vor.u32 %v1060_v48, %v1056_v45  ;;  %v1668_v58 = vrot.slane %v1666_v43, 1 }
  0x5e   : > { %v1072_v62 = vrot.slane %v1070_v46, 1  ;;  %v3954_v46 = vld [vmem:[%s3584_s30 + $0x98] ss:$0 sps:$4 sm:$0x11]  }
  0x5f   : > { %v1066_v40 = vsel %vm517_vm1, %v1061_v34, %v1065_v60  ;;  %v1664_v34 = vshrl.u32 %v2916_v2, 16  ;;  %v1671_v59 = vshll.u32 %v3954_v46, 16  ;;  %v1568_v60 = vshrl.u32 %v2908_v19, 16 }
  0x60   : > { %1881 = vrot.lane.b32.xlu1 %v1844_v55, %s3501_s11  ;;  %v1168_v55 = vrot.slane %v1166_v42, 1  ;;  %v1073_v14 = vor.u32 %v1072_v62, %v1068_v61  ;;  %v2221_v61 = vsel %vm2219_vm2, %v3365_v47, 0  ;;  %v3375_v62 = vld [vmem:[%s4916_s1] sm:$0xff]  }
  0x61   : > { %1865 = vrot.lane.b32.xlu0 %v1820_v0, %s3501_s11  ;;  %v1075_v0 = vshll.u32 %v3900_v52, 16  ;;  %3159 = vmatpush3.bf16.msra.mxu0 %v2221_v61  ;;  %v4022_v47 = vld [vmem:[%s3584_s30 + $0x40] sm:$0xf] }
  0x62   : > { %v1169_v9 = vor.u32 %v1168_v55, %v1164_v11  ;;  %v3370_v11 = vld [vmem:[%s4916_s1 + $0x8] sm:$0xff]   ;;  %v3971_v55 = vld [vmem:[%s3584_s30 + $0x44] ss:$0 sps:$4 sm:$0x11]   ;;  %3199 = vmatpush3.bf16.msra.mxu1 %v2221_v61 }
  0x63   : > { %v1077_v15 = vrot.slane %v1075_v0, 1  ;;  %v2804_v0 = vld [vmem:[%s3584_s30 + $0x90] sm:$0xe]  ;;  %3160 = vmatprep.subr.bf16.mxu0 %v3370_v11  ;;  %3197 = vmatprep.subr.bf16.mxu1 %v3370_v11 }
  0x64   : > { %732 = vrot.lane.b32.xlu1 %v661_v39, %s3496_s6  ;;  %v2892_v39 = vcombine.low %v2732_v3, %v3862_v8  ;;  %v1174_v16 = vsel %vm517_vm1, %v1169_v9, %v1173_v12  ;;  %v1334_v8 = vrot.slane %v3886_v41, 1  ;;  %v1683_v12 = vshll.u32 %v3964_v1, 16 }
  0x65   : > { %716 = vrot.lane.b32.xlu0 %v565_v20, %s3496_s6  ;;  %v2901_v20 = vcombine.low %v2741_v6, %v3872_v10  ;;  %v1575_v6 = vshll.u32 %v3961_v51, 16  ;;  %3161 = vmatpush3.bf16.msra.mxu0 %v3370_v11 }
  0x66   : > { %3200 = vmatpush3.bf16.msra.mxu1 %v3370_v11  ;;  %3162 = vmatprep.subr.bf16.mxu0 %v3375_v62 }
  0x67   : > { %v1336_v10 = vrot.slane %v2901_v20, 1  ;;  %3198 = vmatprep.subr.bf16.mxu1 %v3375_v62 }
  0x68   : > { %859 = vrot.lane.b32.xlu1 %v823_v24, %s3495_s5  ;;  %v1078_v24 = vsel %vm517_vm1, %v1073_v14, %v1077_v15 }
  0x69   : > { %843 = vrot.lane.b32.xlu0 %v799_v27, %s3495_s5  ;;  %v1337_v27 = vrot.slane %v3896_v49, 1  ;;  %v1570_v49 = vshll.u32 %v2908_v19, 16  ;;  %3163 = vmatpush3.bf16.msra.mxu0 %v3375_v62 }
  0x6a   : > { %3201 = vmatpush3.bf16.msra.mxu1 %v3375_v62 }
  0x6b   : > { %v1338_v45 = vsel %vm790_vm0, %v1336_v10, %v1337_v27  ;;  %v1572_v3 = vrot.slane %v1570_v49, 1  ;;  %v1685_v10 = vrot.slane %v1683_v12, 1  ;;  %v4049_v12 = vld [vmem:[%s3584_s30 + $0xa4] ss:$0 sps:$4 sm:$0x11]  }
  0x6c   : > { %861 = vrot.lane.b32.xlu1 %v826_v37, %s3495_s5  ;;  %v2752_v37 = vld [vmem:[%s3584_s30 + $0x3c] sm:$0xf] }
  0x6d   : > { %845 = vrot.lane.b32.xlu0 %v802_v13, %s3495_s5  ;;  %v1313_v13 = vrot.slane %v3900_v52, 1  ;;  %v2909_v44 = vcombine.low %v2752_v37, %v3943_v5 }
  0x6f   : > { %v1582_v54 = vshll.u32 %v2909_v44, 16  ;;  %v1580_v15 = vshrl.u32 %v2909_v44, 16 }
  0x70   : > { %971 = vrot.lane.b32.xlu1 %v2868_v22, %s3494_s4  ;;  %v2893_v22 = vcombine.low %v2733_v4, %v3878_v33  ;;  %v1335_v33 = vsel %vm790_vm0, %v1333_v56, %v1334_v8  ;;  %v1587_v4 = vshll.u32 %v3971_v55, 16  ;;  %v1669_v56 = vor.u32 %v1668_v58, %v1664_v34  ;;  %v2797_v58 = vld [vmem:[%s3584_s30 + $0x3c] sm:$0xe] }
  0x71   : > { %955 = vrot.lane.b32.xlu0 %v2860_v26, %s3494_s4  ;;  %v1309_v26 = vrot.slane %v2892_v39, 1  ;;  %v197_v39 = vld [vmem:[%s3584_s30 + $0x30] sm:$0xf]  ;;  %v1584_v20 = vrot.slane %v1582_v54, 1  ;;  %v1673_v8 = vrot.slane %v1671_v59, 1  ;;  %v1822_v34 = vrot.slane %v3961_v51, 1 }
  0x72   : > { %v1312_v41 = vrot.slane %v2893_v22, 1  ;;  %v1573_v22 = vor.u32 %v1572_v3, %v1568_v60 }
  0x74   : > { %973 = vrot.lane.b32.xlu1 %v2869_v36, %s3494_s4  ;;  %v3937_v36 = vld [vmem:[%s3584_s30 + $0xa0] sm:$0xf]  ;;  %v1314_v48 = vsel %vm790_vm0, %v1312_v41, %v1313_v13 }
  0x75   : > { %957 = vrot.lane.b32.xlu0 %v2861_v17, %s3494_s4  ;;  %v1311_v17 = vsel %vm790_vm0, %v1309_v26, %v1310_v28  ;;  %v2917_v42 = vcombine.low %v2768_v35, %v3937_v36  ;;  %v2948_v28 = vcombine.low %v2804_v0, %v3923_v21  ;;  %v1589_v35 = vrot.slane %v1587_v4, 1 }
  0x76   : > { %v1674_v21 = vsel %vm517_vm1, %v1669_v56, %v1673_v8  ;;  %v4058_v56 = vld [vmem:[%s3584_s30 + $0x44] ss:$0 sps:$4 sm:$0x11]  }
  0x77   : > { %v1678_v52 = vshll.u32 %v2917_v42, 16  ;;  %v1676_v9 = vshrl.u32 %v2917_v42, 16  ;;  %v1845_v43 = vrot.slane %v2948_v28, 1  ;;  %v1849_v28 = vrot.slane %v3964_v1, 1 }
  0x78   : > { %1243 = vrot.lane.b32.xlu1 %v1162_v7, %s3497_s7  ;;  %v3982_v7 = vld [vmem:[%s3584_s30 + $0x94] sm:$0xf] }
  0x79   : > { %1227 = vrot.lane.b32.xlu0 %v1066_v40, %s3497_s7  ;;  %v3987_v40 = vld [vmem:[%s3584_s30 + $0x34] sm:$0xf]  ;;  %v1680_v14 = vrot.slane %v1678_v52, 1  ;;  %v3994_v57 = vcombine.low %v213_v63, %v3982_v7 }
  0x7a   : > { %v3997_v26 = vcombine.low %v197_v39, %v3987_v40 }
  0x7b   : > { %4927 = vst [vmem:[#allocation6_spill] sm:$0xff] %v3994_v57  ;;  %v1681_v30 = vor.u32 %v1680_v14, %v1676_v9  ;;  %v665_v37 = vshll.u32 %v3994_v57, 16  ;;  %v2941_v9 = vcombine.low %v2797_v58, %v3943_v5 }
  0x7c   : > { %1245 = vrot.lane.b32.xlu1 %v1174_v16, %s3497_s7  ;;  %v2796_v16 = vld [vmem:[%s3584_s30 + $0x30] sm:$0xe]  ;;  %4928 = vst [vmem:[#allocation7_spill] sm:$0xff] %v3997_v26  ;;  %v569_v13 = vshll.u32 %v3997_v26, 16  ;;  %v567_v62 = vshrl.u32 %v3997_v26, 16 }
  0x7d   : > { %1229 = vrot.lane.b32.xlu0 %v1078_v24, %s3497_s7  ;;  %v1577_v24 = vrot.slane %v1575_v6, 1  ;;  %v2940_v27 = vcombine.low %v2796_v16, %v3931_v32  ;;  %v1686_v52 = vsel %vm517_vm1, %v1681_v30, %v1685_v10  ;;  %v667_v59 = vrot.slane %v665_v37, 1  ;;  %v249_v37 = vld [vmem:[%s3584_s30 + $0x90] sm:$0xe] }
  0x7e   : > { %v571_v0 = vrot.slane %v569_v13, 1  ;;  %v1824_v10 = vrot.slane %v2941_v9, 1  ;;  %v682_v30 = vshll.u32 %v4049_v12, 16 }
  0x7f   : > { %v1578_v32 = vsel %vm517_vm1, %v1573_v22, %v1577_v24  ;;  %v1821_v54 = vrot.slane %v2940_v27, 1  ;;  %v1825_v27 = vrot.slane %v3971_v55, 1 }
  0x80   : > { %1371 = vrot.lane.b32.xlu1 %v1335_v33, %s3498_s8  ;;  %v4003_v33 = vld [vmem:[%s3584_s30 + $0x98] ss:$0 sps:$4 sm:$0x11]   ;;  %v572_v16 = vor.u32 %v571_v0, %v567_v62  ;;  %v242_v62 = vld [vmem:[%s3584_s30 + $0x3c] sm:$0xe] }
  0x81   : > { %1355 = vrot.lane.b32.xlu0 %v1311_v17, %s3498_s8  ;;  %v4009_v17 = vld [vmem:[%s3584_s30 + $0x38] ss:$0 sps:$4 sm:$0x11]   ;;  %v670_v60 = vshll.u32 %v4003_v33, 16 }
  0x82   : > { %v574_v3 = vshll.u32 %v4009_v17, 16 }
  0x84   : > { %1373 = vrot.lane.b32.xlu1 %v1338_v45, %s3498_s8  ;;  %v199_v45 = vld [vmem:[%s3584_s30 + $0x3c] sm:$0xf]  ;;  %v576_v5 = vrot.slane %v574_v3, 1 }
  0x85   : > { %1357 = vrot.lane.b32.xlu0 %v1314_v48, %s3498_s8  ;;  %v2805_v48 = vld [vmem:[%s3584_s30 + $0x9c] sm:$0xe]  ;;  %v4041_v6 = vcombine.low %v199_v45, %v4022_v47 }
  0x86   : > { %v2949_v51 = vcombine.low %v2805_v48, %v3937_v36  ;;  %v1823_v36 = vsel %vm790_vm0, %v1821_v54, %v1822_v34  ;;  %v577_v13 = vsel %vm517_vm1, %v572_v16, %v576_v5  ;;  %v1826_v34 = vsel %vm790_vm0, %v1824_v10, %v1825_v27  ;;  %v2692_v27 = vld [vmem:[%s3584_s30 + $0x48] sm:$0xf] }
  0x87   : > { %4930 = vst [vmem:[#allocation9_spill] sm:$0xff] %v4041_v6  ;;  %v581_v8 = vshll.u32 %v4041_v6, 16  ;;  %v831_v10 = vrot.slane %v4049_v12, 1 }
  0x88   : > { %1483 = vrot.lane.b32.xlu1 %v2916_v2, %s3499_s9  ;;  %v1585_v2 = vor.u32 %v1584_v20, %v1580_v15  ;;  %v672_v15 = vrot.slane %v670_v60, 1  ;;  %v1848_v22 = vrot.slane %v2949_v51, 1  ;;  %v2706_v51 = vld [vmem:[%s3584_s30 + $0x9c] sm:$0xf] }
  0x89   : > { %1467 = vrot.lane.b32.xlu0 %v2908_v19, %s3499_s9  ;;  %v215_v19 = vld [vmem:[%s3584_s30 + $0x9c] sm:$0xf]  ;;  %v583_v1 = vrot.slane %v581_v8, 1  ;;  %v4113_v8 = vld [vmem:[%s3584_s30 + $0xac] sm:$0xf] }
  0x8a   : > { %v1590_v11 = vsel %vm517_vm1, %v1585_v2, %v1589_v35  ;;  %v1850_v48 = vsel %vm790_vm0, %v1848_v22, %v1849_v28 }
  0x8c   : > { %1485 = vrot.lane.b32.xlu1 %v2917_v42, %s3499_s9  ;;  %v4017_v42 = vld [vmem:[%s3584_s30 + $0xa0] sm:$0xf] }
  0x8d   : > { %1469 = vrot.lane.b32.xlu0 %v2909_v44, %s3499_s9  ;;  %v1846_v44 = vrot.slane %v3954_v46, 1  ;;  %v663_v46 = vshrl.u32 %v3994_v57, 16  ;;  %v4036_v61 = vcombine.low %v215_v19, %v4017_v42  ;;  %v579_v19 = vshrl.u32 %v4041_v6, 16 }
  0x8f   : > { %4929 = vst [vmem:[#allocation8_spill] sm:$0xff] %v4036_v61  ;;  %v1847_v39 = vsel %vm790_vm0, %v1845_v43, %v1846_v44  ;;  %v668_v14 = vor.u32 %v667_v59, %v663_v46  ;;  %v677_v20 = vshll.u32 %v4036_v61, 16  ;;  %v675_v35 = vshrl.u32 %v4036_v61, 16  ;;  %v250_v59 = vld [vmem:[%s3584_s30 + $0x9c] sm:$0xe] }
  0x90   : > { %v4012_v41 = vpop.permute.xlu1 %967  ;;  %1755 = vrot.lane.b32.xlu1 %v1674_v21, %s3500_s10  ;;  %v586_v43 = vshll.u32 %v4058_v56, 16  ;;  %v2854_v44 = vcombine.low %v249_v37, %v3982_v7  ;;  %v584_v58 = vor.u32 %v583_v1, %v579_v19  ;;  %v828_v7 = vrot.slane %v4003_v33, 1  ;;  %v2690_v33 = vld [vmem:[%s3584_s30 + $0x3c] sm:$0xf] }
  0x91   : > { %v4026_v49 = vpop.permute.xlu0 %951  ;;  %1739 = vrot.lane.b32.xlu0 %v1578_v32, %s3500_s10  ;;  %v673_v2 = vsel %vm517_vm1, %v668_v14, %v672_v15  ;;  %v679_v21 = vrot.slane %v677_v20, 1  ;;  %v241_v32 = vld [vmem:[%s3584_s30 + $0x30] sm:$0xe]  ;;  %v4097_v14 = vld [vmem:[%s3584_s30 + $0xa0] sm:$0xf]  ;;  %v2847_v20 = vcombine.low %v242_v62, %v4022_v47  ;;  %v807_v37 = vrot.slane %v4058_v56, 1 }
  0x92   : > { %v2846_v45 = vcombine.low %v241_v32, %v3987_v40  ;;  %v588_v46 = vrot.slane %v586_v43, 1  ;;  %v804_v40 = vrot.slane %v4009_v17, 1  ;;  %v827_v0 = vrot.slane %v2854_v44, 1  ;;  %v4133_v1 = vld [vmem:[%s3584_s30 + $0xa4] ss:$0 sps:$4 sm:$0x11]  }
  0x93   : > { %v2870_v5 = vcombine.low %v2706_v51, %v4097_v14  ;;  %v4149_v62 = vld [vmem:[%s3584_s30 + $0xb0] ss:$0 sps:$4 sm:$0x11]  }
  0x94   : > { %v4044_v63 = vpop.permute.xlu1 %855  ;;  %1757 = vrot.lane.b32.xlu1 %v1686_v52, %s3500_s10  ;;  %v680_v52 = vor.u32 %v679_v21, %v675_v35  ;;  %v803_v3 = vrot.slane %v2846_v45, 1  ;;  %v589_v15 = vsel %vm517_vm1, %v584_v58, %v588_v46  ;;  %v829_v22 = vsel %vm790_vm0, %v827_v0, %v828_v7  ;;  %v4155_v51 = vld [vmem:[%s3584_s30 + $0x50] ss:$0 sps:$4 sm:$0x11]  }
  0x95   : > { %1741 = vrot.lane.b32.xlu0 %v1590_v11, %s3500_s10  ;;  %v684_v11 = vrot.slane %v682_v30, 1  ;;  %v4121_v30 = vld [vmem:[%s3584_s30 + $0x4c] sm:$0xf]  ;;  %v806_v21 = vrot.slane %v2847_v20, 1  ;;  %v1178_v12 = vshll.u32 %v2870_v5, 16 }
  0x96   : > { %v4054_v4 = vpop.permute.xlu0 %839  ;;  %v805_v35 = vsel %vm790_vm0, %v803_v3, %v804_v40  ;;  %v2863_v19 = vcombine.low %v2692_v27, %v4121_v30 }
  0x97   : > { %v685_v9 = vsel %vm517_vm1, %v680_v52, %v684_v11  ;;  %v808_v56 = vsel %vm790_vm0, %v806_v21, %v807_v37  ;;  %v1180_v46 = vrot.slane %v1178_v12, 1  ;;  %v1099_v37 = vshll.u32 %v4155_v51, 16 }
  0x98   : > { %1883 = vrot.lane.b32.xlu1 %v1847_v39, %s3501_s11  ;;  %v2855_v39 = vcombine.low %v250_v59, %v4017_v42  ;;  %v2708_v42 = vld [vmem:[%s3584_s30 + $0xa8] sm:$0xf]  ;;  %v1094_v58 = vshll.u32 %v2863_v19, 16  ;;  %v1183_v59 = vshll.u32 %v4133_v1, 16  ;;  %v1092_v21 = vshrl.u32 %v2863_v19, 16 }
  0x99   : > { %v4062_v24 = vpop.permute.xlu1 %857  ;;  %1867 = vrot.lane.b32.xlu0 %v1823_v36, %s3501_s11  ;;  %v4105_v36 = vld [vmem:[%s3584_s30 + $0x40] sm:$0xf] }
  0x9a   : > { %v830_v28 = vrot.slane %v2855_v39, 1  ;;  %v2862_v47 = vcombine.low %v2690_v33, %v4105_v36  ;;  %v1185_v20 = vrot.slane %v1183_v59, 1  ;;  %v2735_v59 = vld [vmem:[%s3584_s30 + $0x48] sm:$0xe] }
  0x9b   : > { %v4075_v55 = vpop.permute.xlu0 %841 }
  0x9c   : > { %734 = vrot.lane.b32.xlu1 %v673_v2, %s3496_s6  ;;  %v832_v43 = vsel %vm790_vm0, %v830_v28, %v831_v10  ;;  %v1082_v44 = vshll.u32 %v2862_v47, 16  ;;  %v1080_v7 = vshrl.u32 %v2862_v47, 16  ;;  %v1195_v28 = vshll.u32 %v4149_v62, 16  ;;  %v2734_v10 = vld [vmem:[%s3584_s30 + $0x3c] sm:$0xe] }
  0x9d   : > { %718 = vrot.lane.b32.xlu0 %v577_v13, %s3496_s6  ;;  %v2871_v13 = vcombine.low %v2708_v42, %v4113_v8 }
  0x9e   : > { %v4082_v54 = vpop.permute.xlu1 %712  ;;  %v1084_v40 = vrot.slane %v1082_v44, 1  ;;  %v4173_v44 = vld [vmem:[%s3584_s30 + $0xac] sm:$0xf] }
  0x9f   : > { %v4086_v60 = vpop.permute.xlu0 %710  ;;  %v1190_v11 = vshll.u32 %v2871_v13, 16  ;;  %v1188_v33 = vshrl.u32 %v2871_v13, 16 }
  0xa0   : > { %1885 = vrot.lane.b32.xlu1 %v1850_v48, %s3501_s11  ;;  %v4141_v48 = vld [vmem:[%s3584_s30 + $0x44] ss:$0 sps:$4 sm:$0x11]   ;;  %v1085_v42 = vor.u32 %v1084_v40, %v1080_v7  ;;  %v1101_v40 = vrot.slane %v1099_v37, 1 }
  0xa1   : > { %1869 = vrot.lane.b32.xlu0 %v1826_v34, %s3501_s11  ;;  %v1176_v34 = vshrl.u32 %v2870_v5, 16  ;;  %v1087_v3 = vshll.u32 %v4141_v48, 16  ;;  %v1316_v37 = vrot.slane %v4141_v48, 1 }
  0xa2   : > { %v4100_v17 = vpop.permute.xlu1 %728 }
  0xa3   : > { %v4107_v16 = vpop.permute.xlu0 %726  ;;  %v1181_v39 = vor.u32 %v1180_v46, %v1176_v34  ;;  %v1197_v46 = vrot.slane %v1195_v28, 1 }
  0xa4   : > { %736 = vrot.lane.b32.xlu1 %v685_v9, %s3496_s6 }
  0xa5   : > { %720 = vrot.lane.b32.xlu0 %v589_v15, %s3496_s6  ;;  %v2742_v15 = vld [vmem:[%s3584_s30 + $0x9c] sm:$0xe]  ;;  %v1186_v34 = vsel %vm517_vm1, %v1181_v39, %v1185_v20  ;;  %v4194_v39 = vld [vmem:[%s3584_s30 + $0xb8] sm:$0xf] }
  0xa6   : > { %v4123_v2 = vpop.permute.xlu1 %969 }
  0xa7   : > { %v4127_v32 = vpop.permute.xlu0 %953 }
  0xa8   : > { %863 = vrot.lane.b32.xlu1 %v829_v22, %s3495_s5  ;;  %v1192_v22 = vrot.slane %v1190_v11, 1  ;;  %v2743_v11 = vld [vmem:[%s3584_s30 + $0xa8] sm:$0xe] }
  0xa9   : > { %847 = vrot.lane.b32.xlu0 %v805_v35, %s3495_s5  ;;  %v1089_v35 = vrot.slane %v1087_v3, 1  ;;  %v2754_v3 = vld [vmem:[%s3584_s30 + $0x48] sm:$0xf] }
  0xaa   : > { %v4137_v45 = vpop.permute.xlu1 %1239 }
  0xab   : > { %v4143_v52 = vpop.permute.xlu0 %1223 }
  0xac   : > { %865 = vrot.lane.b32.xlu1 %v832_v43, %s3495_s5  ;;  %v2770_v43 = vld [vmem:[%s3584_s30 + $0xa8] sm:$0xf] }
  0xad   : > { %849 = vrot.lane.b32.xlu0 %v808_v56, %s3495_s5  ;;  %v2894_v56 = vcombine.low %v2734_v10, %v4105_v36  ;;  %v4187_v36 = vcombine.low %v2770_v43, %v4173_v44  ;;  %v4190_v10 = vld [vmem:[%s3584_s30 + $0x4c] sm:$0xf] }
  0xae   : > { %v4151_v0 = vpop.permute.xlu1 %1241 }
  0xaf   : > { %v4157_v9 = vpop.permute.xlu0 %1225 }
  0xb0   : > { %975 = vrot.lane.b32.xlu1 %v2870_v5, %s3494_s4  ;;  %v1096_v5 = vrot.slane %v1094_v58, 1  ;;  %v1193_v58 = vor.u32 %v1192_v22, %v1188_v33  ;;  %v2903_v33 = vcombine.low %v2743_v11, %v4113_v8  ;;  %v2895_v22 = vcombine.low %v2735_v59, %v4121_v30  ;;  %v4214_v30 = vld [vmem:[%s3584_s30 + $0x58] sm:$0xf]  ;;  %v4220_v11 = vld [vmem:[%s3584_s30 + $0xb0] ss:$0 sps:$4 sm:$0x11]  }
  0xb1   : > { %959 = vrot.lane.b32.xlu0 %v2862_v47, %s3494_s4  ;;  %v2902_v47 = vcombine.low %v2742_v15, %v4097_v14  ;;  %v1090_v14 = vsel %vm517_vm1, %v1085_v42, %v1089_v35  ;;  %v1340_v42 = vrot.slane %v4133_v1, 1  ;;  %v1315_v35 = vrot.slane %v2894_v56, 1  ;;  %v2756_v1 = vld [vmem:[%s3584_s30 + $0x54] sm:$0xf] }
  0xb2   : > { %v4164_v27 = vpop.permute.xlu1 %1367  ;;  %v1198_v28 = vsel %vm517_vm1, %v1193_v58, %v1197_v46  ;;  %v4207_v8 = vcombine.low %v2754_v3, %v4190_v10  ;;  %v1690_v56 = vshll.u32 %v4187_v36, 16  ;;  %v1343_v58 = vrot.slane %v4149_v62, 1 }
  0xb3   : > { %v4167_v12 = vpop.permute.xlu0 %1351  ;;  %v1339_v20 = vrot.slane %v2902_v47, 1  ;;  %v1318_v46 = vrot.slane %v2895_v22, 1  ;;  %v1319_v59 = vrot.slane %v4155_v51, 1  ;;  %v1317_v3 = vsel %vm790_vm0, %v1315_v35, %v1316_v37  ;;  %v4246_v35 = vld [vmem:[%s3584_s30 + $0x50] ss:$0 sps:$4 sm:$0x11]  }
  0xb4   : > { %977 = vrot.lane.b32.xlu1 %v2871_v13, %s3494_s4  ;;  %v1097_v13 = vor.u32 %v1096_v5, %v1092_v21  ;;  %v1688_v51 = vshrl.u32 %v4187_v36, 16  ;;  %v1913_v22 = vsel %vm1895_vm3, %v3616_v18, %v4107_v16  ;;  %v4256_v16 = vld [vmem:[%s3584_s30 + $0xbc] ss:$0 sps:$4 sm:$0x11]  }
  0xb5   : > { %961 = vrot.lane.b32.xlu0 %v2863_v19, %s3494_s4  ;;  %v2772_v19 = vld [vmem:[%s3584_s30 + $0xb4] sm:$0xf]  ;;  %v1341_v48 = vsel %vm790_vm0, %v1339_v20, %v1340_v42  ;;  %v1692_v20 = vrot.slane %v1690_v56, 1  ;;  %v1695_v42 = vshll.u32 %v4220_v11, 16 }
  0xb6   : > { %v4180_v7 = vpop.permute.xlu1 %1369  ;;  %v1102_v5 = vsel %vm517_vm1, %v1097_v13, %v1101_v40  ;;  %v4210_v47 = vcombine.low %v2772_v19, %v4194_v39  ;;  %v4229_v13 = vcombine.low %v2756_v1, %v4214_v30  ;;  %v1594_v19 = vshll.u32 %v4207_v8, 16 }
  0xb7   : > { %v4184_v15 = vpop.permute.xlu0 %1353  ;;  %v1320_v1 = vsel %vm790_vm0, %v1318_v46, %v1319_v59  ;;  %v4264_v46 = vld [vmem:[%s3584_s30 + $0x5c] ss:$0 sps:$4 sm:$0x11]  }
  0xb8   : > { %1247 = vrot.lane.b32.xlu1 %v1186_v34, %s3497_s7  ;;  %v1342_v34 = vrot.slane %v2903_v33, 1  ;;  %v1702_v33 = vshll.u32 %v4210_v47, 16  ;;  %v1606_v18 = vshll.u32 %v4229_v13, 16  ;;  %v1700_v6 = vshrl.u32 %v4210_v47, 16 }
  0xb9   : > { %1231 = vrot.lane.b32.xlu0 %v1090_v14, %s3497_s7  ;;  %v2806_v14 = vld [vmem:[%s3584_s30 + $0xa8] sm:$0xe]  ;;  %v1611_v57 = vshll.u32 %v4264_v46, 16 }
  0xba   : > { %v4202_v21 = vpop.permute.xlu1 %1479  ;;  %v1344_v37 = vsel %vm790_vm0, %v1342_v34, %v1343_v58  ;;  %v1704_v61 = vrot.slane %v1702_v33, 1  ;;  %v1693_v34 = vor.u32 %v1692_v20, %v1688_v51  ;;  %v1697_v58 = vrot.slane %v1695_v42, 1  ;;  %v217_v20 = vld [vmem:[%s3584_s30 + $0xa8] sm:$0xf]  ;;  %v4276_v42 = vld [vmem:[%s3584_s30 + $0xac] sm:$0xf] }
  0xbb   : > { %v4216_v43 = vpop.permute.xlu0 %1463  ;;  %v1707_v33 = vshll.u32 %v4256_v16, 16  ;;  %v1608_v51 = vrot.slane %v1606_v18, 1 }
  0xbc   : > { %1249 = vrot.lane.b32.xlu1 %v1198_v28, %s3497_s7  ;;  %v2950_v28 = vcombine.low %v2806_v14, %v4173_v44  ;;  %v1592_v44 = vshrl.u32 %v4207_v8, 16  ;;  %v1596_v14 = vrot.slane %v1594_v19, 1  ;;  %v1604_v19 = vshrl.u32 %v4229_v13, 16 }
  0xbd   : > { %1233 = vrot.lane.b32.xlu0 %v1102_v5, %s3497_s7  ;;  %v1897_v5 = vsel %vm1895_vm3, %v3621_v23, %v4086_v60  ;;  %v1946_v23 = vsel %vm1928_vm4, %v1913_v22, %v4044_v63  ;;  %v1698_v18 = vsel %vm517_vm1, %v1693_v34, %v1697_v58 }
  0xbe   : > { %v4231_v40 = vpop.permute.xlu1 %1481  ;;  %v1930_v59 = vsel %vm1928_vm4, %v1897_v5, %v4054_v4  ;;  %v1979_v4 = vsel %vm1961_vm5, %v1946_v23, %v4012_v41  ;;  %v1597_v5 = vor.u32 %v1596_v14, %v1592_v44  ;;  %v4282_v26 = vrot.slane %v2950_v28, 1  ;;  %v4294_v41 = vld [vmem:[%s3584_s30 + $0x4c] sm:$0xf] }
  0xbf   : > { %v4236_v62 = vpop.permute.xlu0 %1465  ;;  %v1609_v14 = vor.u32 %v1608_v51, %v1604_v19  ;;  %v4355_v51 = vld [vmem:[%s3584_s30 + $0xb8] sm:$0xf] }
  0xc0   : > { %1375 = vrot.lane.b32.xlu1 %v1341_v48, %s3498_s8  ;;  %v2798_v48 = vld [vmem:[%s3584_s30 + $0x48] sm:$0xe] }
  0xc1   : > { %1359 = vrot.lane.b32.xlu0 %v1317_v3, %s3498_s8  ;;  %v1599_v3 = vshll.u32 %v4246_v35, 16  ;;  %v2942_v63 = vcombine.low %v2798_v48, %v4190_v10  ;;  %v1963_v10 = vsel %vm1961_vm5, %v1930_v59, %v4026_v49  ;;  %v4303_v49 = vcombine.low %v217_v20, %v4276_v42 }
  0xc2   : > { %v1752_v56 = vpop.permute.xlu1 %1751 }
  0xc3   : > { %v1736_v60 = vpop.permute.xlu0 %1735 }
  0xc4   : > { %1377 = vrot.lane.b32.xlu1 %v1344_v37, %s3498_s8  ;;  %v1705_v37 = vor.u32 %v1704_v61, %v1700_v6  ;;  %v1996_v61 = vsel %vm1994_vm6, %v1963_v10, %v4143_v52  ;;  %v1709_v52 = vrot.slane %v1707_v33, 1  ;;  %v219_v33 = vld [vmem:[%s3584_s30 + $0xb4] sm:$0xf] }
  0xc5   : > { %1361 = vrot.lane.b32.xlu0 %v1320_v1, %s3498_s8  ;;  %v2012_v1 = vsel %vm1994_vm6, %v1979_v4, %v4137_v45  ;;  %v1601_v45 = vrot.slane %v1599_v3, 1  ;;  %v2029_v28 = vsel %vm2027_vm7, %v1996_v61, %v4167_v12  ;;  %v4318_v12 = vcombine.low %v201_v29, %v4294_v41 }
  0xc6   : > { %v4280_v22 = vpop.permute.xlu1 %1753  ;;  %v2045_v6 = vsel %vm2027_vm7, %v2012_v1, %v4164_v27  ;;  %v1915_v27 = vsel %vm1895_vm3, %v3628_v31, %v4100_v17  ;;  %v1613_v31 = vrot.slane %v1611_v57, 1  ;;  %v4326_v17 = vld [vmem:[%s3584_s30 + $0xb0] ss:$0 sps:$4 sm:$0x11]   ;;  %v1852_v29 = vrot.slane %v4220_v11, 1 }
  0xc7   : > { %v4288_v48 = vpop.permute.xlu0 %1737  ;;  %v2078_v44 = vsel %vm2060_vm8, %v2045_v6, %v4202_v21  ;;  %v1899_v21 = vsel %vm1895_vm3, %v3634_v38, %v4082_v54  ;;  %v1827_v38 = vrot.slane %v2942_v63, 1  ;;  %v689_v54 = vshll.u32 %v4303_v49, 16 }
  0xc8   : > { %1487 = vrot.lane.b32.xlu1 %v4187_v36, %s3499_s9  ;;  %v2062_v36 = vsel %vm2060_vm8, %v2029_v28, %v4216_v43  ;;  %v2111_v23 = vsel %vm2093_vm9, %v2078_v44, %v1752_v56  ;;  %v1948_v56 = vsel %vm1928_vm4, %v1915_v27, %v4062_v24  ;;  %v1602_v57 = vsel %vm517_vm1, %v1597_v5, %v1601_v45  ;;  %v203_v5 = vld [vmem:[%s3584_s30 + $0x54] sm:$0xf] }
  0xc9   : > { %1471 = vrot.lane.b32.xlu0 %v4207_v8, %s3499_s9  ;;  %v2095_v8 = vsel %vm2093_vm9, %v2062_v36, %v1736_v60  ;;  %v1828_v11 = vrot.slane %v4246_v35, 1  ;;  %v4343_v60 = vld [vmem:[%s3584_s30 + $0x50] ss:$0 sps:$4 sm:$0x11]   ;;  %v1981_v3 = vsel %vm1961_vm5, %v1948_v56, %v4123_v2  ;;  %v1932_v24 = vsel %vm1928_vm4, %v1899_v21, %v4075_v55  ;;  %v2807_v45 = vld [vmem:[%s3584_s30 + $0xb4] sm:$0xe] }
  0xca   : > { %v1880_v34 = vpop.permute.xlu1 %1879  ;;  %v593_v63 = vshll.u32 %v4318_v12, 16  ;;  %v1965_v35 = vsel %vm1961_vm5, %v1932_v24, %v4127_v32  ;;  %v2014_v2 = vsel %vm1994_vm6, %v1981_v3, %v4151_v0  ;;  %v1614_v55 = vsel %vm517_vm1, %v1609_v14, %v1613_v31  ;;  %v2799_v28 = vld [vmem:[%s3584_s30 + $0x54] sm:$0xe] }
  0xcb   : > { %v1864_v58 = vpop.permute.xlu0 %1863  ;;  %v2144_v59 = vsel %vm2126_vm10, %v2111_v23, %v1880_v34  ;;  %v694_v4 = vshll.u32 %v4326_v17, 16  ;;  %v1998_v1 = vsel %vm1994_vm6, %v1965_v35, %v4157_v9  ;;  %v2047_v10 = vsel %vm2027_vm7, %v2014_v2, %v4180_v7 }
  0xcc   : > { %1489 = vrot.lane.b32.xlu1 %v4210_v47, %s3499_s9  ;;  %v2128_v43 = vsel %vm2126_vm10, %v2095_v8, %v1864_v58  ;;  %3180 = vmatprep.mubr.msk.bf16.mxu1 %vm2186_vm11, %v2144_v59  ;;  %v1710_v47 = vsel %vm517_vm1, %v1705_v37, %v1709_v52  ;;  %v4367_v37 = vld [vmem:[%s3584_s30 + $0x58] sm:$0xf]  ;;  %v691_v32 = vrot.slane %v689_v54, 1  ;;  %v591_v0 = vshrl.u32 %v4318_v12, 16 }
  0xcd   : > { %1473 = vrot.lane.b32.xlu0 %v4229_v13, %s3499_s9  ;;  %3164 = vmatprep.mubr.msk.bf16.mxu0 %vm2186_vm11, %v2128_v43  ;;  %v687_v13 = vshrl.u32 %v4303_v49, 16  ;;  %v2031_v61 = vsel %vm2027_vm7, %v1998_v1, %v4184_v15  ;;  %v2080_v6 = vsel %vm2060_vm8, %v2047_v10, %v4231_v40  ;;  %v598_v9 = vshll.u32 %v4343_v60, 16  ;;  %v4406_v8 = vld [vmem:[%s3584_s30 + $0xbc] ss:$0 sps:$4 sm:$0x11]  }
  0xce   : > { %v4349_v19 = vpop.permute.xlu1 %730  ;;  %v4384_v44 = vcombine.low %v219_v33, %v4355_v51  ;;  %v2064_v7 = vsel %vm2060_vm8, %v2031_v61, %v4236_v62  ;;  %v595_v15 = vrot.slane %v593_v63, 1  ;;  %v4391_v40 = vcombine.low %v203_v5, %v4367_v37  ;;  %v4413_v43 = vld [vmem:[%s3584_s30 + $0x5c] ss:$0 sps:$4 sm:$0x11]  }
  0xcf   : > { %v4361_v20 = vpop.permute.xlu0 %714  ;;  %v2097_v14 = vsel %vm2093_vm9, %v2064_v7, %v4288_v48  ;;  %v2951_v23 = vcombine.low %v2807_v45, %v4194_v39  ;;  %v2943_v62 = vcombine.low %v2799_v28, %v4214_v30  ;;  %v692_v48 = vor.u32 %v691_v32, %v687_v13  ;;  %v252_v28 = vld [vmem:[%s3584_s30 + $0xb4] sm:$0xe] }
  0xd0   : > { %1759 = vrot.lane.b32.xlu1 %v1698_v18, %s3500_s10  ;;  %v2113_v18 = vsel %vm2093_vm9, %v2080_v6, %v4280_v22  ;;  %v1853_v22 = vsel %vm790_vm0, %v4282_v26, %v1852_v29  ;;  %v696_v21 = vrot.slane %v694_v4, 1  ;;  %v701_v39 = vshll.u32 %v4384_v44, 16  ;;  %v244_v7 = vld [vmem:[%s3584_s30 + $0x54] sm:$0xe] }
  0xd1   : > { %1743 = vrot.lane.b32.xlu0 %v1602_v57, %s3500_s10  ;;  %v1829_v58 = vsel %vm790_vm0, %v1827_v38, %v1828_v11  ;;  %v596_v59 = vor.u32 %v595_v15, %v591_v0  ;;  %v600_v31 = vrot.slane %v598_v9, 1  ;;  %v605_v54 = vshll.u32 %v4391_v40, 16 }
  0xd2   : > { %v1882_v52 = vpop.permute.xlu1 %1881  ;;  %v1854_v26 = vrot.slane %v2951_v23, 1  ;;  %v1855_v29 = vrot.slane %v4256_v16, 1  ;;  %v1830_v57 = vrot.slane %v2943_v62, 1  ;;  %v697_v38 = vsel %vm517_vm1, %v692_v48, %v696_v21  ;;  %v2710_v62 = vld [vmem:[%s3584_s30 + $0xb4] sm:$0xf] }
  0xd3   : > { %v2146_v27 = vsel %vm2126_vm10, %v2113_v18, %v1882_v52  ;;  %v1866_v36 = vpop.permute.xlu0 %1865  ;;  %v699_v11 = vshrl.u32 %v4384_v44, 16  ;;  %v703_v3 = vrot.slane %v701_v39, 1  ;;  %v706_v24 = vshll.u32 %v4406_v8, 16  ;;  %v2694_v48 = vld [vmem:[%s3584_s30 + $0x54] sm:$0xf] }
  0xd4   : > { %v2130_v34 = vsel %vm2126_vm10, %v2097_v14, %v1866_v36  ;;  %1761 = vrot.lane.b32.xlu1 %v1710_v47, %s3500_s10  ;;  %3181 = vmatmul.mubr.msk.bf16.vlgmr.msra.gmra.mxu1 %vm2186_vm11, %v2146_v27  ;;  %v1831_v47 = vrot.slane %v4264_v46, 1  ;;  %v601_v63 = vsel %vm517_vm1, %v596_v59, %v600_v31  ;;  %v603_v33 = vshrl.u32 %v4391_v40, 16  ;;  %v251_v46 = vld [vmem:[%s3584_s30 + $0xa8] sm:$0xe] }
  0xd5   : > { %1745 = vrot.lane.b32.xlu0 %v1614_v55, %s3500_s10  ;;  %3165 = vmatmul.mubr.msk.bf16.vlgmr.msra.gmra.mxu0 %vm2186_vm11, %v2130_v34  ;;  %v607_v35 = vrot.slane %v605_v54, 1  ;;  %v610_v16 = vshll.u32 %v4413_v43, 16  ;;  %v243_v55 = vld [vmem:[%s3584_s30 + $0x48] sm:$0xe]  ;;  %v1856_v4 = vsel %vm790_vm0, %v1854_v26, %v1855_v29  ;;  %v704_v5 = vor.u32 %v703_v3, %v699_v11  ;;  %v4458_v34 = vld [vmem:[%s3584_s30 + $0xb8] sm:$0xf] }
  0xd6   : > { %v4409_v30 = vpop.permute.xlu1 %732  ;;  %v708_v1 = vrot.slane %v706_v24, 1  ;;  %v2856_v10 = vcombine.low %v251_v46, %v4276_v42  ;;  %v1832_v0 = vsel %vm790_vm0, %v1830_v57, %v1831_v47  ;;  %v2848_v45 = vcombine.low %v243_v55, %v4294_v41  ;;  %v2712_v26 = vld [vmem:[%s3584_s30 + $0xc0] sm:$0xf]  ;;  %v4478_v29 = vld [vmem:[%s3584_s30 + $0xc4] sm:$0xf] }
  0xd7   : > { %v4416_v56 = vpop.permute.xlu0 %716  ;;  %v608_v61 = vor.u32 %v607_v35, %v603_v33  ;;  %v612_v6 = vrot.slane %v610_v16, 1  ;;  %v834_v52 = vrot.slane %v4326_v17, 1  ;;  %v2857_v15 = vcombine.low %v252_v28, %v4355_v51  ;;  %v4464_v17 = vld [vmem:[%s3584_s30 + $0x58] sm:$0xf]  ;;  %v2696_v47 = vld [vmem:[%s3584_s30 + $0x60] sm:$0xf] }
  0xd8   : > { %1887 = vrot.lane.b32.xlu1 %v1853_v22, %s3501_s11  ;;  %v709_v42 = vsel %vm517_vm1, %v704_v5, %v708_v1  ;;  %v833_v18 = vrot.slane %v2856_v10, 1  ;;  %v809_v27 = vrot.slane %v2848_v45, 1  ;;  %v810_v36 = vrot.slane %v4343_v60, 1  ;;  %v4494_v24 = vld [vmem:[%s3584_s30 + $0x5c] ss:$0 sps:$4 sm:$0x11]  }
  0xd9   : > { %1871 = vrot.lane.b32.xlu0 %v1829_v58, %s3501_s11  ;;  %v613_v41 = vsel %vm517_vm1, %v608_v61, %v612_v6  ;;  %v2849_v23 = vcombine.low %v244_v7, %v4367_v37  ;;  %v836_v51 = vrot.slane %v2857_v15, 1  ;;  %v837_v37 = vrot.slane %v4406_v8, 1  ;;  %v4488_v8 = vld [vmem:[%s3584_s30 + $0xbc] ss:$0 sps:$4 sm:$0x11]  }
  0xda   : > { %v4425_v13 = vpop.permute.xlu1 %859  ;;  %v835_v60 = vsel %vm790_vm0, %v833_v18, %v834_v52  ;;  %v2872_v21 = vcombine.low %v2710_v62, %v4458_v34  ;;  %v811_v58 = vsel %vm790_vm0, %v809_v27, %v810_v36  ;;  %v813_v31 = vrot.slane %v4413_v43, 1  ;;  %v4507_v10 = vld [vmem:[%s3584_s30 + $0xc8] ss:$0 sps:$4 sm:$0x11]  }
  0xdb   : > { %v4431_v2 = vpop.permute.xlu0 %843  ;;  %v812_v59 = vrot.slane %v2849_v23, 1  ;;  %v2864_v54 = vcombine.low %v2694_v48, %v4464_v17  ;;  %v838_v11 = vsel %vm790_vm0, %v836_v51, %v837_v37  ;;  %v2873_v43 = vcombine.low %v2712_v26, %v4478_v29  ;;  %v4512_v28 = vld [vmem:[%s3584_s30 + $0x68] ss:$0 sps:$4 sm:$0x11]   ;;  %v2744_v37 = vld [vmem:[%s3584_s30 + $0xb4] sm:$0xe] }
  0xdc   : > { %738 = vrot.lane.b32.xlu1 %v697_v38, %s3496_s6  ;;  %v4484_v38 = vld [vmem:[%s3584_s30 + $0x64] sm:$0xf]  ;;  %v1202_v3 = vshll.u32 %v2872_v21, 16  ;;  %v1200_v55 = vshrl.u32 %v2872_v21, 16  ;;  %v1111_v1 = vshll.u32 %v4494_v24, 16  ;;  %v1219_v36 = vshll.u32 %v4507_v10, 16 }
  0xdd   : > { %722 = vrot.lane.b32.xlu0 %v601_v63, %s3496_s6  ;;  %v814_v33 = vsel %vm790_vm0, %v812_v59, %v813_v31  ;;  %v2865_v35 = vcombine.low %v2696_v47, %v4484_v38  ;;  %v1106_v16 = vshll.u32 %v2864_v54, 16  ;;  %v1104_v6 = vshrl.u32 %v2864_v54, 16 }
  0xde   : > { %v4438_v32 = vpop.permute.xlu1 %861  ;;  %v1204_v5 = vrot.slane %v1202_v3, 1  ;;  %v1212_v52 = vshrl.u32 %v2873_v43, 16  ;;  %v1123_v51 = vshll.u32 %v4512_v28, 16  ;;  %v2904_v26 = vcombine.low %v2744_v37, %v4458_v34 }
  0xdf   : > { %v4443_v9 = vpop.permute.xlu0 %845  ;;  %v1108_v45 = vrot.slane %v1106_v16, 1  ;;  %v1118_v7 = vshll.u32 %v2865_v35, 16  ;;  %v1116_v48 = vshrl.u32 %v2865_v35, 16 }
  0xe0   : > { %1889 = vrot.lane.b32.xlu1 %v1856_v4, %s3501_s11  ;;  %v1207_v4 = vshll.u32 %v4488_v8, 16  ;;  %v1205_v15 = vor.u32 %v1204_v5, %v1200_v55  ;;  %v2745_v55 = vld [vmem:[%s3584_s30 + $0xc0] sm:$0xe]  ;;  %v1346_v5 = vrot.slane %v4488_v8, 1 }
  0xe1   : > { %1873 = vrot.lane.b32.xlu0 %v1832_v0, %s3501_s11  ;;  %v1214_v0 = vshll.u32 %v2873_v43, 16  ;;  %v1109_v62 = vor.u32 %v1108_v45, %v1104_v6 }
  0xe2   : > { %v4451_v14 = vpop.permute.xlu1 %971  ;;  %v1209_v18 = vrot.slane %v1207_v4, 1  ;;  %v1345_v4 = vrot.slane %v2904_v26, 1 }
  0xe3   : > { %v4460_v22 = vpop.permute.xlu0 %955  ;;  %v1216_v27 = vrot.slane %v1214_v0, 1  ;;  %v4545_v0 = vld [vmem:[%s3584_s30 + $0xc4] sm:$0xf] }
  0xe4   : > { %740 = vrot.lane.b32.xlu1 %v709_v42, %s3496_s6  ;;  %v1210_v59 = vsel %vm517_vm1, %v1205_v15, %v1209_v18  ;;  %v1322_v18 = vrot.slane %v4494_v24, 1  ;;  %v2758_v15 = vld [vmem:[%s3584_s30 + $0x60] sm:$0xf]  ;;  %v1347_v24 = vsel %vm790_vm0, %v1345_v4, %v1346_v5  ;;  %v4596_v4 = vld [vmem:[%s3584_s30 + $0xd4] ss:$0 sps:$4 sm:$0x11]  }
  0xe5   : > { %724 = vrot.lane.b32.xlu0 %v613_v41, %s3496_s6  ;;  %v1113_v41 = vrot.slane %v1111_v1, 1  ;;  %v1217_v31 = vor.u32 %v1216_v27, %v1212_v52  ;;  %v2905_v1 = vcombine.low %v2745_v55, %v4478_v29  ;;  %v2776_v27 = vld [vmem:[%s3584_s30 + $0xcc] sm:$0xf] }
  0xe6   : > { %v4471_v39 = vpop.permute.xlu1 %973 }
  0xe7   : > { %v4480_v57 = vpop.permute.xlu0 %957 }
  0xe8   : > { %867 = vrot.lane.b32.xlu1 %v835_v60, %s3495_s5  ;;  %v1120_v60 = vrot.slane %v1118_v7, 1 }
  0xe9   : > { %851 = vrot.lane.b32.xlu0 %v811_v58, %s3495_s5  ;;  %v2736_v58 = vld [vmem:[%s3584_s30 + $0x54] sm:$0xe] }
  0xea   : > { %v4496_v63 = vpop.permute.xlu1 %1243  ;;  %v1121_v3 = vor.u32 %v1120_v60, %v1116_v48  ;;  %v2896_v16 = vcombine.low %v2736_v58, %v4464_v17  ;;  %v2774_v17 = vld [vmem:[%s3584_s30 + $0xc0] sm:$0xf]  ;;  %v4569_v60 = vld [vmem:[%s3584_s30 + $0xc8] ss:$0 sps:$4 sm:$0x11]  }
  0xeb   : > { %v4500_v46 = vpop.permute.xlu0 %1227  ;;  %v2920_v29 = vcombine.low %v2774_v17, %v4545_v0 }
  0xec   : > { %869 = vrot.lane.b32.xlu1 %v838_v11, %s3495_s5  ;;  %v1114_v11 = vsel %vm517_vm1, %v1109_v62, %v1113_v41  ;;  %v1321_v7 = vrot.slane %v2896_v16, 1  ;;  %v4554_v41 = vld [vmem:[%s3584_s30 + $0x64] sm:$0xf]  ;;  %v1349_v62 = vrot.slane %v4507_v10, 1  ;;  %v1719_v16 = vshll.u32 %v4569_v60, 16 }
  0xed   : > { %853 = vrot.lane.b32.xlu0 %v814_v33, %s3495_s5  ;;  %v1125_v33 = vrot.slane %v1123_v51, 1  ;;  %v2912_v48 = vcombine.low %v2758_v15, %v4554_v41  ;;  %v4585_v10 = vld [vmem:[%s3584_s30 + $0x68] ss:$0 sps:$4 sm:$0x11]  }
  0xee   : > { %v4509_v61 = vpop.permute.xlu1 %1245  ;;  %v1323_v37 = vsel %vm790_vm0, %v1321_v7, %v1322_v18  ;;  %v1623_v17 = vshll.u32 %v4585_v10, 16  ;;  %v1917_v7 = vsel %vm1895_vm3, %v3769_v50, %v4349_v19 }
  0xef   : > { %v4514_v42 = vpop.permute.xlu0 %1229  ;;  %v1126_v45 = vsel %vm517_vm1, %v1121_v3, %v1125_v33  ;;  %v1714_v3 = vshll.u32 %v2920_v29, 16 }
  0xf0   : > { %979 = vrot.lane.b32.xlu1 %v2872_v21, %s3494_s4 }
  0xf1   : > { %963 = vrot.lane.b32.xlu0 %v2864_v54, %s3494_s4  ;;  %v1221_v54 = vrot.slane %v1219_v36, 1  ;;  %v4562_v36 = vld [vmem:[%s3584_s30 + $0xd0] sm:$0xf]  ;;  %v1716_v18 = vrot.slane %v1714_v3, 1  ;;  %v1625_v3 = vrot.slane %v1623_v17, 1 }
  0xf2   : > { %v4519_v23 = vpop.permute.xlu1 %1371  ;;  %v4579_v26 = vcombine.low %v2776_v27, %v4562_v36  ;;  %v1901_v27 = vsel %vm1895_vm3, %v3772_v53, %v4361_v20  ;;  %v1731_v53 = vshll.u32 %v4596_v4, 16 }
  0xf3   : > { %v4523_v21 = vpop.permute.xlu0 %1355  ;;  %v1222_v34 = vsel %vm517_vm1, %v1217_v31, %v1221_v54  ;;  %v2760_v31 = vld [vmem:[%s3584_s30 + $0x6c] sm:$0xf]  ;;  %v1934_v50 = vsel %vm1928_vm4, %v1901_v27, %v4431_v2 }
  0xf4   : > { %981 = vrot.lane.b32.xlu1 %v2873_v43, %s3494_s4  ;;  %v1724_v15 = vshrl.u32 %v4579_v26, 16 }
  0xf5   : > { %965 = vrot.lane.b32.xlu0 %v2865_v35, %s3494_s4  ;;  %v2737_v35 = vld [vmem:[%s3584_s30 + $0x60] sm:$0xe] }
  0xf6   : > { %v4530_v47 = vpop.permute.xlu1 %1373  ;;  %v2897_v52 = vcombine.low %v2737_v35, %v4484_v38  ;;  %v1348_v38 = vrot.slane %v2905_v1, 1  ;;  %v1712_v1 = vshrl.u32 %v2920_v29, 16 }
  0xf7   : > { %v4535_v43 = vpop.permute.xlu0 %1357 }
  0xf8   : > { %1251 = vrot.lane.b32.xlu1 %v1210_v59, %s3497_s7  ;;  %v1324_v58 = vrot.slane %v2897_v52, 1  ;;  %v1325_v59 = vrot.slane %v4512_v28, 1  ;;  %v1350_v33 = vsel %vm790_vm0, %v1348_v38, %v1349_v62  ;;  %v1618_v28 = vshll.u32 %v2912_v48, 16 }
  0xf9   : > { %1235 = vrot.lane.b32.xlu0 %v1114_v11, %s3497_s7  ;;  %v4582_v11 = vld [vmem:[%s3584_s30 + $0x70] sm:$0xf]  ;;  %v1616_v52 = vshrl.u32 %v2912_v48, 16  ;;  %v1721_v38 = vrot.slane %v1719_v16, 1  ;;  %v1717_v16 = vor.u32 %v1716_v18, %v1712_v1 }
  0xfa   : > { %v4547_v6 = vpop.permute.xlu1 %1483  ;;  %v1326_v35 = vsel %vm790_vm0, %v1324_v58, %v1325_v59  ;;  %v1620_v62 = vrot.slane %v1618_v28, 1 }
  0xfb   : > { %v4556_v8 = vpop.permute.xlu0 %1467 }
  0xfc   : > { %1253 = vrot.lane.b32.xlu1 %v1222_v34, %s3497_s7  ;;  %v4593_v34 = vcombine.low %v2760_v31, %v4582_v11  ;;  %v1621_v17 = vor.u32 %v1620_v62, %v1616_v52  ;;  %v1919_v52 = vsel %vm1895_vm3, %v3807_v25, %v4409_v30 }
  0xfd   : > { %1237 = vrot.lane.b32.xlu0 %v1126_v45, %s3497_s7  ;;  %v1726_v45 = vshll.u32 %v4579_v26, 16  ;;  %s3043_s7 = sshll.u32 %s3484_s15, 11 }
  0xfe   : > { %v4571_v51 = vpop.permute.xlu1 %1485  ;;  %v1630_v20 = vshll.u32 %v4593_v34, 16  ;;  %v1628_v28 = vshrl.u32 %v4593_v34, 16  ;;  %v1626_v25 = vsel %vm517_vm1, %v1621_v17, %v1625_v3 }
  0xff   : > { %v4576_v54 = vpop.permute.xlu0 %1469 }
 0x100   : > { %1379 = vrot.lane.b32.xlu1 %v1347_v24, %s3498_s8  ;;  %v1950_v24 = vsel %vm1928_vm4, %v1917_v7, %v4425_v13  ;;  %v1967_v13 = vsel %vm1961_vm5, %v1934_v50, %v4460_v22  ;;  %v1632_v7 = vrot.slane %v1630_v20, 1 }
 0x101   : > { %1363 = vrot.lane.b32.xlu0 %v1323_v37, %s3498_s8  ;;  %v4612_v37 = vld [vmem:[%s3584_s30 + $0x74] ss:$0 sps:$4 sm:$0x11]   ;;  %v1983_v19 = vsel %vm1961_vm5, %v1950_v24, %v4451_v14  ;;  %v2000_v2 = vsel %vm1994_vm6, %v1967_v13, %v4500_v46 }
 0x102   : > { %v1756_v55 = vpop.permute.xlu1 %1755  ;;  %v2016_v59 = vsel %vm1994_vm6, %v1983_v19, %v4496_v63  ;;  %v2033_v22 = vsel %vm2027_vm7, %v2000_v2, %v4523_v21  ;;  %v1635_v46 = vshll.u32 %v4612_v37, 16  ;;  %v2801_v19 = vld [vmem:[%s3584_s30 + $0x6c] sm:$0xe] }
 0x103   : > { %v1740_v5 = vpop.permute.xlu0 %1739  ;;  %v2049_v14 = vsel %vm2027_vm7, %v2016_v59, %v4519_v23  ;;  %v2066_v23 = vsel %vm2060_vm8, %v2033_v22, %v4556_v8  ;;  %v1837_v22 = vrot.slane %v4612_v37, 1 }
 0x104   : > { %1381 = vrot.lane.b32.xlu1 %v1350_v33, %s3498_s8  ;;  %v1728_v33 = vrot.slane %v1726_v45, 1  ;;  %v2082_v63 = vsel %vm2060_vm8, %v2049_v14, %v4547_v6  ;;  %v1733_v45 = vrot.slane %v1731_v53, 1  ;;  %v2099_v18 = vsel %vm2093_vm9, %v2066_v23, %v1740_v5  ;;  %v4931_v5 = vld [vmem:[#allocation5_spill] sm:$0xff] }
 0x105   : > { %1365 = vrot.lane.b32.xlu0 %v1326_v35, %s3498_s8  ;;  %v2808_v35 = vld [vmem:[%s3584_s30 + $0xc0] sm:$0xe]  ;;  %v1637_v30 = vrot.slane %v1635_v46, 1 }
 0x106   : > { %v4618_v58 = vpop.permute.xlu1 %1757  ;;  %v1729_v24 = vor.u32 %v1728_v33, %v1724_v15  ;;  %v2952_v6 = vcombine.low %v2808_v35, %v4545_v0  ;;  %v1903_v0 = vsel %vm1895_vm3, %v4931_v5, %v4416_v56  ;;  %v1952_v15 = vsel %vm1928_vm4, %v1919_v52, %v4438_v32  ;;  %v2809_v32 = vld [vmem:[%s3584_s30 + $0xcc] sm:$0xe] }
 0x107   : > { %v4626_v31 = vpop.permute.xlu0 %1741  ;;  %v1633_v56 = vor.u32 %v1632_v7, %v1628_v28  ;;  %v2953_v33 = vcombine.low %v2809_v32, %v4562_v36 }
 0x108   : > { %1491 = vrot.lane.b32.xlu1 %v2920_v29, %s3499_s9  ;;  %v2115_v29 = vsel %vm2093_vm9, %v2082_v63, %v1756_v55  ;;  %v1722_v55 = vsel %vm517_vm1, %v1717_v16, %v1721_v38  ;;  %v1985_v38 = vsel %vm1961_vm5, %v1952_v15, %v4471_v39  ;;  %v1857_v13 = vrot.slane %v2952_v6, 1 }
 0x109   : > { %1475 = vrot.lane.b32.xlu0 %v2912_v48, %s3499_s9  ;;  %v2800_v48 = vld [vmem:[%s3584_s30 + $0x60] sm:$0xe]  ;;  %v2018_v53 = vsel %vm1994_vm6, %v1985_v38, %v4509_v61  ;;  %v4932_v38 = vld [vmem:[#allocation6_spill] sm:$0xff]  ;;  %s175_s30 = sand.u32 1, %s3476_s13  }
 0x10a   : > { %v1884_v1 = vpop.permute.xlu1 %1883  ;;  %v2944_v50 = vcombine.low %v2800_v48, %v4554_v41  ;;  %v2051_v59 = vsel %vm2027_vm7, %v2018_v53, %v4530_v47  ;;  %v1858_v41 = vrot.slane %v4569_v60, 1  ;;  %s2680_s4 = sshll.u32 %s175_s30, 7  ;;  %s4869_s15 = scalar_lea.sflag [#allocation3], %s175_s30 }
 0x10b   : > { %v2148_v21 = vsel %vm2126_vm10, %v2115_v29, %v1884_v1  ;;  %v1868_v27 = vpop.permute.xlu0 %1867  ;;  %v2084_v3 = vsel %vm2060_vm8, %v2051_v59, %v4571_v51  ;;  %s4816_s5 = scalar_lea.vmem [#allocation2], %s2680_s4 }
 0x10c   : > { %v2132_v8 = vsel %vm2126_vm10, %v2099_v18, %v1868_v27  ;;  %1493 = vrot.lane.b32.xlu1 %v4579_v26, %s3499_s9  ;;  %3184 = vmatprep.mubr.msk.bf16.mxu1 %vm2186_vm11, %v2148_v21  ;;  %v1936_v26 = vsel %vm1928_vm4, %v1903_v0, %v4443_v9  ;;  %v1734_v9 = vsel %vm517_vm1, %v1729_v24, %v1733_v45  ;;  %v1833_v14 = vrot.slane %v2944_v50, 1  ;;  %v4933_v50 = vld [vmem:[#allocation7_spill] sm:$0xff]  ;;  %s2592_s8 = sshll.u32 %s4816_s5, 4  ;;  %s4863_s8 = int_to_ptr.vmem [resolvable:$true] %s2592_s8 }
 0x10d   : > { %1477 = vrot.lane.b32.xlu0 %v4593_v34, %s3499_s9  ;;  %3168 = vmatprep.mubr.msk.bf16.mxu0 %vm2186_vm11, %v2132_v8  ;;  %v1969_v34 = vsel %vm1961_vm5, %v1936_v26, %v4480_v57  ;;  %v1834_v57 = vrot.slane %v4585_v10, 1  ;;  %v2117_v60 = vsel %vm2093_vm9, %v2084_v3, %v4618_v58  ;;  %v1638_v10 = vsel %vm517_vm1, %v1633_v56, %v1637_v30  ;;  %s3416_s18 = scalar_lea.vmem %s4863_s8, 2048  ;;  %p3423_p1 = scmp.lt.s32.totalorder %s4863_s8, %s3421_s21 }
 0x10e   : > { %v4669_v62 = vpop.permute.xlu1 %734  ;;  %v2002_v39 = vsel %vm1994_vm6, %v1969_v34, %v4514_v42  ;;  %v2945_v42 = vcombine.low %v2801_v19, %v4582_v11  ;;  %v1860_v11 = vrot.slane %v2953_v33, 1  ;;  %v1861_v58 = vrot.slane %v4596_v4, 1  ;;  %p3417_p12 = scmp.ne.s32.totalorder %s4863_s8, %s3416_s18  ;;  %p3424_p2 = scmp.lt.s32.totalorder %s3422_s23, %s3416_s18 }
 0x10f   : > { %v4678_v20 = vpop.permute.xlu0 %718  ;;  %v2035_v61 = vsel %vm2027_vm7, %v2002_v39, %v4535_v43  ;;  %v1921_v56 = vsel %vm1895_vm3, %v4932_v38, %v4669_v62 }
 0x110   : > { %1763 = vrot.lane.b32.xlu1 %v1722_v55, %s3500_s10  ;;  %v2068_v47 = vsel %vm2060_vm8, %v2035_v61, %v4576_v54  ;;  %v1859_v54 = vsel %vm790_vm0, %v1857_v13, %v1858_v41  ;;  %v1836_v35 = vrot.slane %v2945_v42, 1  ;;  %v1862_v17 = vsel %vm790_vm0, %v1860_v11, %v1861_v58  ;;  %p3418_p13 = pnand %p3417_p12, %p3564_p4  ;;  %p3425_p3 = por %p3424_p2, %p3423_p1 }
 0x111   : > { %1747 = vrot.lane.b32.xlu0 %v1626_v25, %s3500_s10  ;;  %v2101_v43 = vsel %vm2093_vm9, %v2068_v47, %v4626_v31  ;;  %v1835_v31 = vsel %vm790_vm0, %v1833_v14, %v1834_v57  ;;  %v1905_v32 = vsel %vm1895_vm3, %v4933_v50, %v4678_v20 }
 0x112   : > { %v1886_v2 = vpop.permute.xlu1 %1885  ;;  %v1838_v23 = vsel %vm790_vm0, %v1836_v35, %v1837_v22  ;;  %p3419_p0 = pneg %p3418_p13 }
 0x113   : > { %v2150_v51 = vsel %vm2126_vm10, %v2117_v60, %v1886_v2  ;;  %v1870_v16 = vpop.permute.xlu0 %1869  ;;  %v4934_v2 = vld [vmem:[#allocation8_spill] sm:$0xff] }
 0x114   : > { %v2134_v36 = vsel %vm2126_vm10, %v2101_v43, %v1870_v16  ;;  %1765 = vrot.lane.b32.xlu1 %v1734_v9, %s3500_s10  ;;  %3185 = vmatmul.mubr.msk.bf16.gmra.mxu1 %vm2186_vm11, %v2150_v51  ;;  %v4935_v43 = vld [vmem:[#allocation9_spill] sm:$0xff]  ;;  %p3426_p5 = pnand %p3425_p3, %p3419_p0 }
 0x115   : > { %1749 = vrot.lane.b32.xlu0 %v1638_v10, %s3500_s10  ;;  %3169 = vmatmul.mubr.msk.bf16.gmra.mxu0 %vm2186_vm11, %v2134_v36 }
 0x116   : > { %v737_v28 = vpop.permute.xlu1 %736 }
 0x117   : > { %v721_v63 = vpop.permute.xlu0 %720  ;;  %v1923_v10 = vsel %vm1895_vm3, %v4934_v2, %v737_v28 }
 0x118   : > { %1891 = vrot.lane.b32.xlu1 %v1859_v54, %s3501_s11  ;;  %v1907_v51 = vsel %vm1895_vm3, %v4935_v43, %v721_v63 }
 0x119   : > { %1875 = vrot.lane.b32.xlu0 %v1835_v31, %s3501_s11 }
 0x11a   : > { %v864_v46 = vpop.permute.xlu1 %863 }
 0x11b   : > { %v848_v29 = vpop.permute.xlu0 %847  ;;  %v1954_v19 = vsel %vm1928_vm4, %v1921_v56, %v864_v46 }
 0x11c   : > { %1893 = vrot.lane.b32.xlu1 %v1862_v17, %s3501_s11  ;;  %v1938_v34 = vsel %vm1928_vm4, %v1905_v32, %v848_v29 }
 0x11d   : > { %1877 = vrot.lane.b32.xlu0 %v1838_v23, %s3501_s11  ;;  %s4860_s11 = scalar_lea.hbm %s4918_s3, %s3043_s7 }
 0x11e   : > { %v866_v4 = vpop.permute.xlu1 %865 }
 0x11f   : > { %v850_v1 = vpop.permute.xlu0 %849  ;;  %v1956_v16 = vsel %vm1928_vm4, %v1923_v10, %v866_v4 }
 0x120   : > { %v1940_v36 = vsel %vm1928_vm4, %v1907_v51, %v850_v1 }
 0x122   : > { %v976_v45 = vpop.permute.xlu1 %975 }
 0x123   : > { %v960_v7 = vpop.permute.xlu0 %959  ;;  %v1987_v53 = vsel %vm1961_vm5, %v1954_v19, %v976_v45 }
 0x124   : > { %v1971_v13 = vsel %vm1961_vm5, %v1938_v34, %v960_v7 }
 0x126   : > { %v978_v37 = vpop.permute.xlu1 %977 }
 0x127   : > { %v962_v18 = vpop.permute.xlu0 %961  ;;  %v1989_v54 = vsel %vm1961_vm5, %v1956_v16, %v978_v37 }
 0x128   : > { %v1973_v58 = vsel %vm1961_vm5, %v1940_v36, %v962_v18 }
 0x12a   : > { %v1248_v21 = vpop.permute.xlu1 %1247 }
 0x12b   : > { %v1232_v27 = vpop.permute.xlu0 %1231  ;;  %v2020_v39 = vsel %vm1994_vm6, %v1987_v53, %v1248_v21 }
 0x12c   : > { %v2004_v41 = vsel %vm1994_vm6, %v1971_v13, %v1232_v27 }
 0x12e   : > { %v1250_v24 = vpop.permute.xlu1 %1249 }
 0x12f   : > { %v1234_v6 = vpop.permute.xlu0 %1233  ;;  %v2022_v28 = vsel %vm1994_vm6, %v1989_v54, %v1250_v24 }
 0x130   : > { %v2006_v35 = vsel %vm1994_vm6, %v1973_v58, %v1234_v6 }
 0x132   : > { %v1376_v48 = vpop.permute.xlu1 %1375 }
 0x133   : > { %v1360_v52 = vpop.permute.xlu0 %1359  ;;  %v2053_v62 = vsel %vm2027_vm7, %v2020_v39, %v1376_v48 }
 0x134   : > { %v2037_v57 = vsel %vm2027_vm7, %v2004_v41, %v1360_v52 }
 0x136   : > { %v1378_v8 = vpop.permute.xlu1 %1377 }
 0x137   : > { %v1362_v55 = vpop.permute.xlu0 %1361  ;;  %v2055_v22 = vsel %vm2027_vm7, %v2022_v28, %v1378_v8 }
 0x138   : > { %v2039_v63 = vsel %vm2027_vm7, %v2006_v35, %v1362_v55 }
 0x13a   : > { %v1488_v5 = vpop.permute.xlu1 %1487 }
 0x13b   : > { %v1472_v0 = vpop.permute.xlu0 %1471  ;;  %v2086_v20 = vsel %vm2060_vm8, %v2053_v62, %v1488_v5 }
 0x13c   : > { %v2070_v61 = vsel %vm2060_vm8, %v2037_v57, %v1472_v0 }
 0x13e   : > { %v1490_v15 = vpop.permute.xlu1 %1489 }
 0x13f   : > { %v1474_v25 = vpop.permute.xlu0 %1473  ;;  %v2088_v17 = vsel %vm2060_vm8, %v2055_v22, %v1490_v15 }
 0x140   : > { %v2072_v46 = vsel %vm2060_vm8, %v2039_v63, %v1474_v25 }
 0x142   : > { %v1760_v30 = vpop.permute.xlu1 %1759 }
 0x143   : > { %v1744_v26 = vpop.permute.xlu0 %1743  ;;  %v2119_v3 = vsel %vm2093_vm9, %v2086_v20, %v1760_v30 }
 0x144   : > { %v2103_v42 = vsel %vm2093_vm9, %v2070_v61, %v1744_v26 }
 0x146   : > { %v1762_v9 = vpop.permute.xlu1 %1761 }
 0x147   : > { %v1746_v59 = vpop.permute.xlu0 %1745  ;;  %v2121_v23 = vsel %vm2093_vm9, %v2088_v17, %v1762_v9 }
 0x148   : > { %v2105_v4 = vsel %vm2093_vm9, %v2072_v46, %v1746_v59 }
 0x14a   : > { %v1888_v33 = vpop.permute.xlu1 %1887 }
 0x14b   : > { %v2152_v47 = vsel %vm2126_vm10, %v2119_v3, %v1888_v33  ;;  %v1872_v60 = vpop.permute.xlu0 %1871 }
 0x14c   : > { %v2136_v14 = vsel %vm2126_vm10, %v2103_v42, %v1872_v60  ;;  %3188 = vmatprep.mubr.msk.bf16.mxu1 %vm2186_vm11, %v2152_v47 }
 0x14d   : > { %3172 = vmatprep.mubr.msk.bf16.mxu0 %vm2186_vm11, %v2136_v14 }
 0x14e   : > { %v739_v11 = vpop.permute.xlu1 %738 }
 0x14f   : > { %v723_v31 = vpop.permute.xlu0 %722  ;;  %v1925_v13 = vsel %vm1895_vm3, %v4303_v49, %v739_v11 }
 0x150   : > { %v1909_v39 = vsel %vm1895_vm3, %v4318_v12, %v723_v31 }
 0x152   : > { %v1890_v29 = vpop.permute.xlu1 %1889 }
 0x153   : > { %v2154_v1 = vsel %vm2126_vm10, %v2121_v23, %v1890_v29  ;;  %v1874_v45 = vpop.permute.xlu0 %1873 }
 0x154   : > { %v2138_v7 = vsel %vm2126_vm10, %v2105_v4, %v1874_v45  ;;  %3189 = vmatmul.mubr.msk.bf16.gmra.mxu1 %vm2186_vm11, %v2154_v1  ;;  %v4803_v45 = vld [vmem:[%s4917_s2] ss:$0 sm:$0xff] }
 0x155   : > { %3173 = vmatmul.mubr.msk.bf16.gmra.mxu0 %vm2186_vm11, %v2138_v7 }
 0x156   : > { %v741_v37 = vpop.permute.xlu1 %740 }
 0x157   : > { %v725_v18 = vpop.permute.xlu0 %724  ;;  %v1927_v33 = vsel %vm1895_vm3, %v4384_v44, %v741_v37 }
 0x158   : > { %v1911_v12 = vsel %vm1895_vm3, %v4391_v40, %v725_v18 }
 0x15a   : > { %v868_v21 = vpop.permute.xlu1 %867 }
 0x15b   : > { %v852_v27 = vpop.permute.xlu0 %851  ;;  %v1958_v59 = vsel %vm1928_vm4, %v1925_v13, %v868_v21 }
 0x15c   : > { %v1942_v41 = vsel %vm1928_vm4, %v1909_v39, %v852_v27 }
 0x15e   : > { %v870_v24 = vpop.permute.xlu1 %869 }
 0x15f   : > { %v854_v6 = vpop.permute.xlu0 %853  ;;  %v1960_v47 = vsel %vm1928_vm4, %v1927_v33, %v870_v24 }
 0x160   : > { %v1944_v10 = vsel %vm1928_vm4, %v1911_v12, %v854_v6 }
 0x162   : > { %v980_v48 = vpop.permute.xlu1 %979 }
 0x163   : > { %v964_v52 = vpop.permute.xlu0 %963  ;;  %v1991_v62 = vsel %vm1961_vm5, %v1958_v59, %v980_v48 }
 0x164   : > { %v1975_v20 = vsel %vm1961_vm5, %v1942_v41, %v964_v52 }
 0x166   : > { %v982_v8 = vpop.permute.xlu1 %981 }
 0x167   : > { %v966_v55 = vpop.permute.xlu0 %965  ;;  %v1993_v14 = vsel %vm1961_vm5, %v1960_v47, %v982_v8 }
 0x168   : > { %v1977_v16 = vsel %vm1961_vm5, %v1944_v10, %v966_v55 }
 0x16a   : > { %v1252_v5 = vpop.permute.xlu1 %1251 }
 0x16b   : > { %v1236_v0 = vpop.permute.xlu0 %1235  ;;  %v2024_v61 = vsel %vm1994_vm6, %v1991_v62, %v1252_v5 }
 0x16c   : > { %v2008_v49 = vsel %vm1994_vm6, %v1975_v20, %v1236_v0 }
 0x16e   : > { %v1254_v15 = vpop.permute.xlu1 %1253 }
 0x16f   : > { %v1238_v25 = vpop.permute.xlu0 %1237  ;;  %v2026_v36 = vsel %vm1994_vm6, %v1993_v14, %v1254_v15 }
 0x170   : > { %v2010_v58 = vsel %vm1994_vm6, %v1977_v16, %v1238_v25 }
 0x172   : > { %v1380_v30 = vpop.permute.xlu1 %1379 }
 0x173   : > { %v1364_v26 = vpop.permute.xlu0 %1363  ;;  %v2057_v42 = vsel %vm2027_vm7, %v2024_v61, %v1380_v30 }
 0x174   : > { %v2041_v60 = vsel %vm2027_vm7, %v2008_v49, %v1364_v26 }
 0x176   : > { %v1382_v38 = vpop.permute.xlu1 %1381 }
 0x177   : > { %v1366_v56 = vpop.permute.xlu0 %1365  ;;  %v2059_v28 = vsel %vm2027_vm7, %v2026_v36, %v1382_v38 }
 0x178   : > { %v2043_v35 = vsel %vm2027_vm7, %v2010_v58, %v1366_v56 }
 0x17a   : > { %v1492_v50 = vpop.permute.xlu1 %1491 }
 0x17b   : > { %v1476_v32 = vpop.permute.xlu0 %1475  ;;  %v2090_v2 = vsel %vm2060_vm8, %v2057_v42, %v1492_v50 }
 0x17c   : > { %v2074_v43 = vsel %vm2060_vm8, %v2041_v60, %v1476_v32 }
 0x17e   : > { %v1494_v19 = vpop.permute.xlu1 %1493 }
 0x17f   : > { %v1478_v34 = vpop.permute.xlu0 %1477  ;;  %v2092_v22 = vsel %vm2060_vm8, %v2059_v28, %v1494_v19 }
 0x180   : > { %v2076_v63 = vsel %vm2060_vm8, %v2043_v35, %v1478_v34 }
 0x182   : > { %v1764_v53 = vpop.permute.xlu1 %1763 }
 0x183   : > { %v1748_v9 = vpop.permute.xlu0 %1747  ;;  %v2123_v44 = vsel %vm2093_vm9, %v2090_v2, %v1764_v53 }
 0x184   : > { %v2107_v40 = vsel %vm2093_vm9, %v2074_v43, %v1748_v9 }
 0x186   : > { %v1766_v57 = vpop.permute.xlu1 %1765 }
 0x187   : > { %v1750_v3 = vpop.permute.xlu0 %1749  ;;  %v2125_v17 = vsel %vm2093_vm9, %v2092_v22, %v1766_v57 }
 0x188   : > { %v2109_v23 = vsel %vm2093_vm9, %v2076_v63, %v1750_v3 }
 0x18a   : > { %v1892_v51 = vpop.permute.xlu1 %1891 }
 0x18b   : > { %v2156_v54 = vsel %vm2126_vm10, %v2123_v44, %v1892_v51  ;;  %v1876_v11 = vpop.permute.xlu0 %1875 }
 0x18c   : > { %v2140_v31 = vsel %vm2126_vm10, %v2107_v40, %v1876_v11  ;;  %3192 = vmatprep.mubr.msk.bf16.mxu1 %vm2186_vm11, %v2156_v54 }
 0x18d   : > { %3176 = vmatprep.mubr.msk.bf16.mxu0 %vm2186_vm11, %v2140_v31 }
 0x18e   : > { %v1894_v46 = vpop.permute.xlu1 %1893 }
 0x18f   : > { %v2158_v29 = vsel %vm2126_vm10, %v2125_v17, %v1894_v46  ;;  %v1878_v4 = vpop.permute.xlu0 %1877 }
 0x190   : > { %v2142_v1 = vsel %vm2126_vm10, %v2109_v23, %v1878_v4  ;;  %3193 = vmatmul.mubr.msk.bf16.gmra.mxu1 %vm2186_vm11, %v2158_v29 }
 0x191   : > { %3177 = vmatmul.mubr.msk.bf16.gmra.mxu0 %vm2186_vm11, %v2142_v1 }
 0x194   : > { %v3182_v7 = vpop.f32.mrf.mxu1 }
 0x195   : > { %v3166_v37 = vpop.f32.mrf.mxu0  ;;  %v2330_v21 = vadd.f32 %v3182_v7, %v4803_v45 }
 0x196   : > { %v2321_v18 = vpop.f32.mrf.mxu1  ;;  %v2266_v24 = vadd.f32 %v3166_v37, %v4803_v45 }
 0x197   : > { %v2257_v27 = vpop.f32.mrf.mxu0  ;;  %v2322_v48 = vadd.f32 %v4803_v45, %v2321_v18  ;;  %v2402_v15 = vmax.f32 %v2330_v21, 0.0 }
 0x198   : > { %v3183_v6 = vpop.f32.mrf.mxu1  ;;  %v2258_v55 = vadd.f32 %v4803_v45, %v2257_v27  ;;  %v2386_v38 = vmax.f32 %v2266_v24, 0.0 }
 0x199   : > { %v3167_v52 = vpop.f32.mrf.mxu0  ;;  %v2333_v8 = vadd.f32 %v3183_v6, %v4803_v45  ;;  %v2400_v32 = vmax.f32 %v2322_v48, 0.0 }
 0x19a   : > { %v2269_v5 = vadd.f32 %v3167_v52, %v4803_v45  ;;  %v2324_v0 = vpop.f32.mrf.mxu1  ;;  %v2384_v53 = vmax.f32 %v2258_v55, 0.0 }
 0x19b   : > { %v2403_v25 = vmax.f32 %v2333_v8, 0.0  ;;  %v2260_v30 = vpop.f32.mrf.mxu0  ;;  %v2325_v26 = vadd.f32 %v4803_v45, %v2324_v0 }
 0x19c   : > { %v2387_v56 = vmax.f32 %v2269_v5, 0.0  ;;  %v2261_v50 = vadd.f32 %v4803_v45, %v2260_v30 }
 0x19d   : > { %v3092_v19 = vpack.c.bf16 %v2403_v25, %v2402_v15  ;;  %v2401_v34 = vmax.f32 %v2325_v26, 0.0 }
 0x19e   : > { %v3052_v9 = vpack.c.bf16 %v2387_v56, %v2386_v38  ;;  %v2385_v13 = vmax.f32 %v2261_v50, 0.0 }
 0x19f   : > { %3132 = vst [vmem:[%s4816_s5 + $0x48] sm:$0xff] %v3092_v19   ;;  %v3087_v39 = vpack.c.bf16 %v2401_v34, %v2400_v32 }
 0x1a0   : > { %3124 = vst [vmem:[%s4816_s5 + $0x8] sm:$0xff] %v3052_v9   ;;  %v3047_v59 = vpack.c.bf16 %v2385_v13, %v2384_v53 }
 0x1a1   : > { %3131 = vst [vmem:[%s4816_s5 + $0x40] sm:$0xff] %v3087_v39  }
 0x1a2   : > { %3048 = vst [vmem:[%s4816_s5] sm:$0xff] %v3047_v59  }
 0x1d4   : > { %v3186_v41 = vpop.f32.mrf.mxu1 }
 0x1d5   : > { %v3170_v62 = vpop.f32.mrf.mxu0  ;;  %v2346_v20 = vadd.f32 %v3186_v41, %v4803_v45 }
 0x1d6   : > { %v2337_v57 = vpop.f32.mrf.mxu1  ;;  %v2282_v3 = vadd.f32 %v3170_v62, %v4803_v45 }
 0x1d7   : > { %v2273_v61 = vpop.f32.mrf.mxu0  ;;  %v2338_v49 = vadd.f32 %v4803_v45, %v2337_v57  ;;  %v2406_v10 = vmax.f32 %v2346_v20, 0.0 }
 0x1d8   : > { %v3187_v33 = vpop.f32.mrf.mxu1  ;;  %v2274_v47 = vadd.f32 %v4803_v45, %v2273_v61  ;;  %v2390_v51 = vmax.f32 %v2282_v3, 0.0 }
 0x1d9   : > { %v3171_v42 = vpop.f32.mrf.mxu0  ;;  %v2349_v12 = vadd.f32 %v3187_v33, %v4803_v45  ;;  %v2404_v40 = vmax.f32 %v2338_v49, 0.0 }
 0x1da   : > { %v2285_v60 = vadd.f32 %v3171_v42, %v4803_v45  ;;  %v2340_v2 = vpop.f32.mrf.mxu1  ;;  %v2388_v58 = vmax.f32 %v2274_v47, 0.0 }
 0x1db   : > { %v2407_v14 = vmax.f32 %v2349_v12, 0.0  ;;  %v2276_v43 = vpop.f32.mrf.mxu0  ;;  %v2341_v44 = vadd.f32 %v4803_v45, %v2340_v2 }
 0x1dc   : > { %v2391_v16 = vmax.f32 %v2285_v60, 0.0  ;;  %v2277_v36 = vadd.f32 %v4803_v45, %v2276_v43 }
 0x1dd   : > { %v3102_v54 = vpack.c.bf16 %v2407_v14, %v2406_v10  ;;  %v2405_v11 = vmax.f32 %v2341_v44, 0.0 }
 0x1de   : > { %v3062_v28 = vpack.c.bf16 %v2391_v16, %v2390_v51  ;;  %v2389_v31 = vmax.f32 %v2277_v36, 0.0 }
 0x1df   : > { %3134 = vst [vmem:[%s4816_s5 + $0x58] sm:$0xff] %v3102_v54   ;;  %v3097_v35 = vpack.c.bf16 %v2405_v11, %v2404_v40 }
 0x1e0   : > { %3126 = vst [vmem:[%s4816_s5 + $0x18] sm:$0xff] %v3062_v28   ;;  %v3057_v22 = vpack.c.bf16 %v2389_v31, %v2388_v58 }
 0x1e1   : > { %3133 = vst [vmem:[%s4816_s5 + $0x50] sm:$0xff] %v3097_v35  }
 0x1e2   : > { %3125 = vst [vmem:[%s4816_s5 + $0x10] sm:$0xff] %v3057_v22  }
 0x214   : > { %v3190_v63 = vpop.f32.mrf.mxu1 }
 0x215   : > { %v3174_v17 = vpop.f32.mrf.mxu0  ;;  %v2362_v23 = vadd.f32 %v3190_v63, %v4803_v45 }
 0x216   : > { %v2353_v46 = vpop.f32.mrf.mxu1  ;;  %v2298_v4 = vadd.f32 %v3174_v17, %v4803_v45 }
 0x217   : > { %v2289_v29 = vpop.f32.mrf.mxu0  ;;  %v2354_v7 = vadd.f32 %v4803_v45, %v2353_v46  ;;  %v2410_v6 = vmax.f32 %v2362_v23, 0.0 }
 0x218   : > { %v3191_v1 = vpop.f32.mrf.mxu1  ;;  %v2290_v21 = vadd.f32 %v4803_v45, %v2289_v29  ;;  %v2394_v55 = vmax.f32 %v2298_v4, 0.0 }
 0x219   : > { %v3175_v37 = vpop.f32.mrf.mxu0  ;;  %v2365_v18 = vadd.f32 %v3191_v1, %v4803_v45  ;;  %v2408_v15 = vmax.f32 %v2354_v7, 0.0 }
 0x21a   : > { %v2301_v27 = vadd.f32 %v3175_v37, %v4803_v45  ;;  %v2356_v24 = vpop.f32.mrf.mxu1  ;;  %v2392_v26 = vmax.f32 %v2290_v21, 0.0 }
 0x21b   : > { %v2411_v48 = vmax.f32 %v2365_v18, 0.0  ;;  %v2292_v52 = vpop.f32.mrf.mxu0  ;;  %v2357_v8 = vadd.f32 %v4803_v45, %v2356_v24 }
 0x21c   : > { %v2395_v5 = vmax.f32 %v2301_v27, 0.0  ;;  %v2293_v0 = vadd.f32 %v4803_v45, %v2292_v52 }
 0x21d   : > { %v3112_v25 = vpack.c.bf16 %v2411_v48, %v2410_v6  ;;  %v2409_v30 = vmax.f32 %v2357_v8, 0.0 }
 0x21e   : > { %v3072_v38 = vpack.c.bf16 %v2395_v5, %v2394_v55  ;;  %v2393_v56 = vmax.f32 %v2293_v0, 0.0 }
 0x21f   : > { %3136 = vst [vmem:[%s4816_s5 + $0x68] sm:$0xff] %v3112_v25   ;;  %v3107_v50 = vpack.c.bf16 %v2409_v30, %v2408_v15 }
 0x220   : > { %3128 = vst [vmem:[%s4816_s5 + $0x28] sm:$0xff] %v3072_v38   ;;  %v3067_v32 = vpack.c.bf16 %v2393_v56, %v2392_v26 }
 0x221   : > { %3135 = vst [vmem:[%s4816_s5 + $0x60] sm:$0xff] %v3107_v50  }
 0x222   : > { %3127 = vst [vmem:[%s4816_s5 + $0x20] sm:$0xff] %v3067_v32  }
 0x250   : > { %v3194_v19 = vpop.f32.mrf.mxu1 }
 0x251   : > { %v3178_v34 = vpop.f32.mrf.mxu0  ;;  %v2378_v9 = vadd.f32 %v3194_v19, %v4803_v45 }
 0x252   : > { %v2369_v53 = vpop.f32.mrf.mxu1  ;;  %v2314_v39 = vadd.f32 %v3178_v34, %v4803_v45 }
 0x253   : > { %v2305_v13 = vpop.f32.mrf.mxu0  ;;  %v2370_v41 = vadd.f32 %v4803_v45, %v2369_v53  ;;  %v2414_v33 = vmax.f32 %v2378_v9, 0.0 }
 0x254   : > { %v3195_v59 = vpop.f32.mrf.mxu1  ;;  %v2306_v20 = vadd.f32 %v4803_v45, %v2305_v13  ;;  %v2398_v47 = vmax.f32 %v2314_v39, 0.0 }
 0x255   : > { %v3179_v62 = vpop.f32.mrf.mxu0  ;;  %v2381_v57 = vadd.f32 %v3195_v59, %v4803_v45  ;;  %v2412_v10 = vmax.f32 %v2370_v41, 0.0 }
 0x256   : > { %v2317_v61 = vadd.f32 %v3179_v62, %v4803_v45  ;;  %v2372_v3 = vpop.f32.mrf.mxu1  ;;  %v2396_v44 = vmax.f32 %v2306_v20, 0.0 }
 0x257   : > { %v2415_v49 = vmax.f32 %v2381_v57, 0.0  ;;  %v2308_v42 = vpop.f32.mrf.mxu0  ;;  %v2373_v12 = vadd.f32 %v4803_v45, %v2372_v3 }
 0x258   : > { %v2399_v60 = vmax.f32 %v2317_v61, 0.0  ;;  %v2309_v2 = vadd.f32 %v4803_v45, %v2308_v42 }
 0x259   : > { %v3122_v14 = vpack.c.bf16 %v2415_v49, %v2414_v33  ;;  %v2413_v43 = vmax.f32 %v2373_v12, 0.0 }
 0x25a   : > { %v3082_v51 = vpack.c.bf16 %v2399_v60, %v2398_v47  ;;  %v2397_v16 = vmax.f32 %v2309_v2, 0.0 }
 0x25b   : > { %3138 = vst [vmem:[%s4816_s5 + $0x78] sm:$0xff] %v3122_v14   ;;  %v3117_v36 = vpack.c.bf16 %v2413_v43, %v2412_v10 }
 0x25c   : > { %3130 = vst [vmem:[%s4816_s5 + $0x38] sm:$0xff] %v3082_v51   ;;  %v3077_v45 = vpack.c.bf16 %v2397_v16, %v2396_v44 }
 0x25d   : > { %3137 = vst [vmem:[%s4816_s5 + $0x70] sm:$0xff] %v3117_v36  }
 0x25e   : > { %3129 = vst [vmem:[%s4816_s5 + $0x30] sm:$0xff] %v3077_v45  }
 0x25f   : > { %3429 = shalt.err (!%p3426_p5)
}
 0x260   : > { %s3430_s26 = scalar_lea.hbm %s4860_s11, 2048  ;;  %s3434_s29 = scalar_lea.hbm %s4918_s3, 4096 }
 0x261   : > { %p3431_p6 = scmp.ne.s32.totalorder %s4860_s11, %s3430_s26  ;;  %p3435_p10 = scmp.lt.s32.totalorder %s4860_s11, %s4918_s3 }
 0x262   : > { %p3436_p11 = scmp.lt.s32.totalorder %s3434_s29, %s3430_s26 }
 0x263   : > { %p3432_p7 = pnand %p3431_p6, %p3564_p4 }
 0x264   : > { %p3437_p12 = por %p3436_p11, %p3435_p10 }
 0x265   : > { %p3433_p9 = pneg %p3432_p7 }
 0x267   : > { %p3438_p13 = pnand %p3437_p12, %p3433_p9 }
 0x269   : > { %3441 = shalt.err (!%p3438_p13)
}
 0x26a   : > { %s3503_s5 = smov 64  }
 0x26b   : > { %3205 = dma.vmem_to_hbm [thread:$0]  (%p3564_p4), %s4863_s8, 2048, %s4860_s11, %s4869_s15, %s3503_s5, %s3503_s5, %s3496_s6  }
 0x26c PF: > { %p3211_p0 = scmp.ge.s32.totalorder %s3492_s17, 2  ;;  %s2607_s7 = sand.u32 1, %s3472_s12  }
 0x26d   : > { %s2608_s9 = scalar_lea.sflag [#allocation3], %s2607_s7 }
 0x26e   : > { %p3208_p1 = pnand %p3211_p0, %p3571_p8 }
 0x270   : > { %p3209_p2 = pneg %p3208_p1 }
 0x272   : > { %3467 = dma.done.wait (%p3209_p2), %s2608_s9, 2048  }
 0x273   : > { %3469 = vsyncadd (%p3209_p2), %s2608_s9, 4294965248  ;;  %s16_s17 = sadd.s32 1, %s3492_s17   ;;  %s4936_s12 = smov %s3476_s13 }
 0x274   : > { %p13_p3 = scmp.ge.s32.totalorder %s16_s17, 4   ;;  %s4937_s13 = smov %s3480_s14 }
 0x275   : > { %s4938_s14 = smov %s3577_s25  ;;  %s4939_s15 = smov %s3488_s16 }
 0x276   : > { %s4940_s16 = smov %s4942_s20  ;;  %15 = sbr.rel (!%p13_p3) target bundleno = 4 (0x4), region = 70 }
 0x27b   :  { %2613 = vsyncpa [#allocation3], 1 }
 0x27c   :  { %2615 = vsyncpa [#allocation3 + $0x1], 1 }

</bundles_post_ra>
